<compile_context>
chip_gen: v7x
topology: tpu7x:2x2x1
jax: 0.10.0
libtpu: 0.0.40
codegen_flags: <defaults>
</compile_context>

<pallas_src>
import functools

import jax
import jax.numpy as jnp
from jax import lax
from jax.experimental import pallas as pl
from jax.experimental.pallas import tpu as pltpu

_OUT_PAD = 128   # lane-dense output width for the final Linear(2L -> 1)
_SUBLANE = 8     # f32 sublane tile


# ------------------------------ fused model kernel -----------------------------
def _fused_kernel(num_layers, batch_pad, seq_len, *refs):
    """refs = (x, [w_ih, w_hh, b]*num_layers, w1, b1, w2, b2, w3p, b3p,
               out, seq_a, seq_b, gin_sc)."""
    x_ref = refs[0]
    lstm_refs = refs[1:1 + 3 * num_layers]
    m = 1 + 3 * num_layers
    w1_ref, b1_ref, w2_ref, b2_ref, w3_ref, b3_ref = refs[m:m + 6]
    out_ref = refs[m + 6]
    seq_bufs = (refs[m + 7], refs[m + 8])   # ping-pong per-layer sequence scratch
    gin_sc = refs[m + 9]                    # (T*Bp, 4H) hoisted input projection

    hidden = lstm_refs[1].shape[0]
    four_h = 4 * hidden

    # Activation constants, hoisted once (every layer has the same hidden size).
    # PyTorch gate order along lanes is i, f, g, o; only the "g" block uses
    # tanh, the others use sigmoid(x) = 0.5 * tanh(0.5 * x) + 0.5.
    def gate_consts(rows):
        lane = lax.broadcasted_iota(jnp.int32, (rows, four_h), 1)
        is_g = (lane >= 2 * hidden) & (lane < 3 * hidden)
        scale = jnp.where(is_g, 1.0, 0.5).astype(jnp.float32)   # tanh-arg / post scale
        shift = jnp.where(is_g, 0.0, 0.5).astype(jnp.float32)   # sigmoid offset
        return scale, shift

    pre_row, _ = gate_consts(1)               # (1, 4H): folds 0.5 into gin / W_hh
    post_a, post_b = gate_consts(batch_pad)   # (Bp, 4H): per-step fma constants

    in_ref = x_ref
    for layer in range(num_layers):
        w_ih = lstm_refs[3 * layer][...]        # (D_in, 4H), pre-transposed
        w_hh = lstm_refs[3 * layer + 1][...]    # (H, 4H),  pre-transposed
        bias = lstm_refs[3 * layer + 2][...]    # (1, 4H) = b_ih + b_hh
        out_buf = seq_bufs[layer % 2]

        # Hoisted input projection: one big matmul per layer, pre-scaled for the
        # tanh-only activation and materialized into VMEM scratch so the
        # unrolled loop does small aligned reloads instead of keeping the whole
        # (N, 4H) value live across the recurrence.
        gin_sc[...] = (jnp.dot(in_ref[...], w_ih,
                               preferred_element_type=jnp.float32) + bias) * pre_row
        w_hh_s = w_hh * pre_row                 # scaled once per layer

        h = jnp.zeros((batch_pad, hidden), jnp.float32)
        c = jnp.zeros((batch_pad, hidden), jnp.float32)
        # TODO(synk): for large T switch to lax.fori_loop(unroll=2..4) and keep
        # W_hh staged in the MXU via pltpu.matmul_push_rhs/acc_lhs/pop.
        for t in range(seq_len):                # fully unrolled (static, small T)
            gates = gin_sc[pl.ds(t * batch_pad, batch_pad), :] + jnp.dot(
                h, w_hh_s, preferred_element_type=jnp.float32)        # (Bp, 4H)
            act = post_a * jnp.tanh(gates) + post_b                   # 1 EUP pass
            i_g = act[:, 0 * hidden:1 * hidden]
            f_g = act[:, 1 * hidden:2 * hidden]
            g_g = act[:, 2 * hidden:3 * hidden]
            o_g = act[:, 3 * hidden:4 * hidden]
            c = f_g * c + i_g * g_g
            h = o_g * jnp.tanh(c)
            out_buf[pl.ds(t * batch_pad, batch_pad), :] = h
        in_ref = out_buf                        # next layer reads this sequence

    feat = in_ref[...]                          # (T*Bp, H) full LSTM output

    # MLP head: Linear -> Tanh -> Linear -> Tanh -> Linear -> ReLU.  The last
    # Linear is zero-padded to 128 output lanes so the HBM store is lane-dense;
    # the wrapper slices lane 0.
    z = jnp.tanh(jnp.dot(feat, w1_ref[...], preferred_element_type=jnp.float32)
                 + b1_ref[...])
    z = jnp.tanh(jnp.dot(z, w2_ref[...], preferred_element_type=jnp.float32)
                 + b2_ref[...])
    z = jnp.dot(z, w3_ref[...], preferred_element_type=jnp.float32) + b3_ref[...]
    out_ref[...] = jnp.maximum(z, 0.0)


def live_trading_forward(x, params):
    """x: (T, B, lstm_input_size), seq-first like nn.LSTM(batch_first=False)."""
    T, B, D = x.shape
    num_layers = len(params["lstm"])
    H = params["lstm"][0][1].shape[0]
    w1, b1, w2, b2, w3, b3 = params["mlp"]

    # Pad batch up to a full 8-sublane tile so every per-step access is aligned.
    B_pad = max(_SUBLANE, -(-B // _SUBLANE) * _SUBLANE)
    if B_pad != B:
        x = jnp.pad(x, ((0, 0), (0, B_pad - B), (0, 0)))
    x_flat = x.reshape(T * B_pad, D).astype(jnp.float32)

    # Pad the (2L, 1) projection / (1, 1) bias to 128 lanes (zeros elsewhere).
    w3p = jnp.zeros((w3.shape[0], _OUT_PAD), jnp.float32).at[:, :1].set(w3)
    b3p = jnp.zeros((1, _OUT_PAD), jnp.float32).at[:, :1].set(b3)

    lstm_flat = [a for triple in params["lstm"] for a in triple]
    inputs = [x_flat] + lstm_flat + [w1, b1, w2, b2, w3p, b3p]

    vmem = pl.BlockSpec(memory_space=pltpu.MemorySpace.VMEM)   # whole array in VMEM
    out = pl.pallas_call(
        functools.partial(_fused_kernel, num_layers, B_pad, T),
        out_shape=jax.ShapeDtypeStruct((T * B_pad, _OUT_PAD), jnp.float32),
        in_specs=[vmem] * len(inputs),
        out_specs=vmem,
        scratch_shapes=[pltpu.VMEM((T * B_pad, H), jnp.float32),       # seq ping
                        pltpu.VMEM((T * B_pad, H), jnp.float32),       # seq pong
                        pltpu.VMEM((T * B_pad, 4 * H), jnp.float32)],  # gate stream
        compiler_params=pltpu.CompilerParams(vmem_limit_bytes=32 * 1024 * 1024),
    )(*inputs)
    return out.reshape(T, B_pad, _OUT_PAD)[:, :B, :1]


# --------------------------------- parameters ----------------------------------
def init_params(key, lstm_input_size, lstm_hidden_size, num_layers, linear_hidden_size):
    """Deterministic init mimicking PyTorch defaults (uniform(-1/sqrt(fan), 1/sqrt(fan)))."""
    H, L = lstm_hidden_size, linear_hidden_size
    params = {"lstm": [], "mlp": None}
    k_lstm = 1.0 / jnp.sqrt(H)
    for layer in range(num_layers):
        d_in = lstm_input_size if layer == 0 else H
        key, k1, k2, k3, k4 = jax.random.split(key, 5)
        w_ih_t = jax.random.uniform(k1, (d_in, 4 * H), jnp.float32, -k_lstm, k_lstm)
        w_hh_t = jax.random.uniform(k2, (H, 4 * H), jnp.float32, -k_lstm, k_lstm)
        b_ih = jax.random.uniform(k3, (1, 4 * H), jnp.float32, -k_lstm, k_lstm)
        b_hh = jax.random.uniform(k4, (1, 4 * H), jnp.float32, -k_lstm, k_lstm)
        # If nn.LSTM's bias arg were False, pass zeros here instead of b_ih + b_hh.
        params["lstm"].append((w_ih_t, w_hh_t, b_ih + b_hh))

    def lin(key, fan_in, fan_out):
        k = 1.0 / jnp.sqrt(fan_in)
        kw, kb = jax.random.split(key)
        w = jax.random.uniform(kw, (fan_in, fan_out), jnp.float32, -k, k)
        b = jax.random.uniform(kb, (1, fan_out), jnp.float32, -k, k)
        return w, b

    key, ka, kb_, kc = jax.random.split(key, 4)
    w1, b1 = lin(ka, H, L)
    w2, b2 = lin(kb_, L, 2 * L)
    w3, b3 = lin(kc, 2 * L, 1)
    params["mlp"] = (w1, b1, w2, b2, w3, b3)
    return params


# ------------------------------ pure-JAX reference ------------------------------
def _ref_forward(x, params):
    h_seq = x
    for (w_ih_t, w_hh_t, b) in params["lstm"]:
        T, B, _ = h_seq.shape
        H = w_hh_t.shape[0]
        h = jnp.zeros((B, H), jnp.float32)
        c = jnp.zeros((B, H), jnp.float32)
        outs = []
        for t in range(T):
            gates = h_seq[t] @ w_ih_t + h @ w_hh_t + b
            i = jax.nn.sigmoid(gates[:, 0 * H:1 * H])
            f = jax.nn.sigmoid(gates[:, 1 * H:2 * H])
            g = jnp.tanh(gates[:, 2 * H:3 * H])
            o = jax.nn.sigmoid(gates[:, 3 * H:4 * H])
            c = f * c + i * g
            h = o * jnp.tanh(c)
            outs.append(h)
        h_seq = jnp.stack(outs, axis=0)
    w1, b1, w2, b2, w3, b3 = params["mlp"]
    z = jnp.tanh(h_seq @ w1 + b1)
    z = jnp.tanh(z @ w2 + b2)
    return jnp.maximum(z @ w3 + b3, 0.0)


if __name__ == "__main__":
    lstm_input_size = 16
    lstm_hidden_size = 32
    num_layer = 2
    bidirectional = True      # maps to nn.LSTM's `bias` arg (see note at top)
    linear_hidden_size = 32
    T, B = 8, 2               # seq-first: x is (T, B, lstm_input_size)

    key = jax.random.PRNGKey(0)
    key, kx = jax.random.split(key)
    x = jax.random.normal(kx, (T, B, lstm_input_size), jnp.float32)

    params = init_params(key, lstm_input_size, lstm_hidden_size, num_layer,
                         linear_hidden_size)

    out = live_trading_forward(x, params)
    out = jax.block_until_ready(out)

    ref = _ref_forward(x, params)
    assert out.shape == (T, B, 1)
    assert jnp.allclose(out, ref, atol=1e-4, rtol=1e-4), "mismatch vs reference"

    print("KERNEL_OK")
</pallas_src>

<mosaic_0001>
module attributes {stable_mosaic.version = 11 : i64} {
  func.func @_fused_kernel(%arg0: memref<64x16xf32, #tpu.memory_space<vmem>>, %arg1: memref<16x128xf32, #tpu.memory_space<vmem>>, %arg2: memref<32x128xf32, #tpu.memory_space<vmem>>, %arg3: memref<1x128xf32, #tpu.memory_space<vmem>>, %arg4: memref<32x128xf32, #tpu.memory_space<vmem>>, %arg5: memref<32x128xf32, #tpu.memory_space<vmem>>, %arg6: memref<1x128xf32, #tpu.memory_space<vmem>>, %arg7: memref<32x32xf32, #tpu.memory_space<vmem>>, %arg8: memref<1x32xf32, #tpu.memory_space<vmem>>, %arg9: memref<32x64xf32, #tpu.memory_space<vmem>>, %arg10: memref<1x64xf32, #tpu.memory_space<vmem>>, %arg11: memref<64x128xf32, #tpu.memory_space<vmem>>, %arg12: memref<1x128xf32, #tpu.memory_space<vmem>>, %arg13: memref<64x128xf32, #tpu.memory_space<vmem>>, %arg14: memref<64x32xf32, #tpu.memory_space<vmem>>, %arg15: memref<64x32xf32, #tpu.memory_space<vmem>>, %arg16: memref<64x128xf32, #tpu.memory_space<vmem>>) attributes {dimension_semantics = [], scalar_prefetch = 0 : i64, scratch_operands = 3 : i64, tpu.core_type = #tpu.core_type<tc>} {
    %0 = tpu.iota {dimensions = array<i32: 1>} : vector<1x128xi32>
    %c64_i32 = arith.constant 64 : i32
    %1 = vector.broadcast %c64_i32 : i32 to vector<1x128xi32>
    %2 = arith.cmpi sge, %0, %1 : vector<1x128xi32>
    %c96_i32 = arith.constant 96 : i32
    %3 = vector.broadcast %c96_i32 : i32 to vector<1x128xi32>
    %4 = arith.cmpi slt, %0, %3 : vector<1x128xi32>
    %5 = arith.andi %2, %4 : vector<1x128xi1>
    %cst = arith.constant 1.000000e+00 : f32
    %cst_0 = arith.constant 5.000000e-01 : f32
    %6 = vector.broadcast %cst : f32 to vector<1x128xf32>
    %7 = vector.broadcast %cst_0 : f32 to vector<1x128xf32>
    %8 = arith.select %5, %6, %7 : vector<1x128xi1>, vector<1x128xf32>
    %9 = tpu.iota {dimensions = array<i32: 1>} : vector<8x128xi32>
    %c64_i32_1 = arith.constant 64 : i32
    %10 = vector.broadcast %c64_i32_1 : i32 to vector<8x128xi32>
    %11 = arith.cmpi sge, %9, %10 : vector<8x128xi32>
    %c96_i32_2 = arith.constant 96 : i32
    %12 = vector.broadcast %c96_i32_2 : i32 to vector<8x128xi32>
    %13 = arith.cmpi slt, %9, %12 : vector<8x128xi32>
    %14 = arith.andi %11, %13 : vector<8x128xi1>
    %cst_3 = arith.constant 1.000000e+00 : f32
    %cst_4 = arith.constant 5.000000e-01 : f32
    %15 = vector.broadcast %cst_3 : f32 to vector<8x128xf32>
    %16 = vector.broadcast %cst_4 : f32 to vector<8x128xf32>
    %17 = arith.select %14, %15, %16 : vector<8x128xi1>, vector<8x128xf32>
    %cst_5 = arith.constant 0.000000e+00 : f32
    %cst_6 = arith.constant 5.000000e-01 : f32
    %18 = vector.broadcast %cst_5 : f32 to vector<8x128xf32>
    %19 = vector.broadcast %cst_6 : f32 to vector<8x128xf32>
    %20 = arith.select %14, %18, %19 : vector<8x128xi1>, vector<8x128xf32>
    %c0 = arith.constant 0 : index
    %c0_7 = arith.constant 0 : index
    %21 = vector.load %arg1[%c0, %c0_7] : memref<16x128xf32, #tpu.memory_space<vmem>>, vector<16x128xf32>
    %c0_8 = arith.constant 0 : index
    %c0_9 = arith.constant 0 : index
    %22 = vector.load %arg2[%c0_8, %c0_9] : memref<32x128xf32, #tpu.memory_space<vmem>>, vector<32x128xf32>
    %c0_10 = arith.constant 0 : index
    %c0_11 = arith.constant 0 : index
    %23 = vector.load %arg3[%c0_10, %c0_11] : memref<1x128xf32, #tpu.memory_space<vmem>>, vector<1x128xf32>
    %c0_12 = arith.constant 0 : index
    %c0_13 = arith.constant 0 : index
    %24 = vector.load %arg0[%c0_12, %c0_13] : memref<64x16xf32, #tpu.memory_space<vmem>>, vector<64x16xf32>
    %cst_14 = arith.constant dense<0.000000e+00> : vector<64x128xf32>
    %25 = tpu.matmul %24, %21, %cst_14 {dimension_numbers = #tpu.dot_dimension_numbers<[1], [0], [0], [1], [0, 0, 1, 1], [], []>} : vector<64x16xf32>, vector<16x128xf32>, vector<64x128xf32> -> vector<64x128xf32>
    %26 = vector.broadcast %23 : vector<1x128xf32> to vector<64x128xf32>
    %27 = arith.addf %25, %26 : vector<64x128xf32>
    %28 = vector.broadcast %8 : vector<1x128xf32> to vector<64x128xf32>
    %29 = arith.mulf %27, %28 : vector<64x128xf32>
    %c0_15 = arith.constant 0 : index
    %c0_16 = arith.constant 0 : index
    %30 = vector.load %arg16[%c0_15, %c0_16] : memref<64x128xf32, #tpu.memory_space<vmem>>, vector<64x128xf32>
    tpu.vector_store %arg16[%c0_15, %c0_16], %29 {strides = array<i32>} : memref<64x128xf32, #tpu.memory_space<vmem>>, vector<64x128xf32>,
    %31 = vector.broadcast %8 : vector<1x128xf32> to vector<32x128xf32>
    %32 = arith.mulf %22, %31 : vector<32x128xf32>
    %cst_17 = arith.constant 0.000000e+00 : f32
    %33 = vector.broadcast %cst_17 : f32 to vector<8x32xf32>
    %cst_18 = arith.constant 0.000000e+00 : f32
    %34 = vector.broadcast %cst_18 : f32 to vector<8x32xf32>
    %c0_19 = arith.constant 0 : index
    %c0_20 = arith.constant 0 : index
    %35 = vector.load %arg16[%c0_19, %c0_20] : memref<64x128xf32, #tpu.memory_space<vmem>>, vector<8x128xf32>
    %cst_21 = arith.constant dense<0.000000e+00> : vector<8x128xf32>
    %36 = tpu.matmul %33, %32, %cst_21 {dimension_numbers = #tpu.dot_dimension_numbers<[1], [0], [0], [1], [0, 0, 1, 1], [], []>} : vector<8x32xf32>, vector<32x128xf32>, vector<8x128xf32> -> vector<8x128xf32>
    %37 = arith.addf %35, %36 : vector<8x128xf32>
    %38 = math.tanh %37 : vector<8x128xf32>
    %39 = arith.mulf %17, %38 : vector<8x128xf32>
    %40 = arith.addf %39, %20 : vector<8x128xf32>
    %41 = vector.extract_strided_slice %40 {offsets = [0, 0], sizes = [8, 32], strides = [1, 1]} : vector<8x128xf32> to vector<8x32xf32>
    %42 = vector.extract_strided_slice %40 {offsets = [0, 32], sizes = [8, 32], strides = [1, 1]} : vector<8x128xf32> to vector<8x32xf32>
    %43 = vector.extract_strided_slice %40 {offsets = [0, 64], sizes = [8, 32], strides = [1, 1]} : vector<8x128xf32> to vector<8x32xf32>
    %44 = vector.extract_strided_slice %40 {offsets = [0, 96], sizes = [8, 32], strides = [1, 1]} : vector<8x128xf32> to vector<8x32xf32>
    %45 = arith.mulf %42, %34 : vector<8x32xf32>
    %46 = arith.mulf %41, %43 : vector<8x32xf32>
    %47 = arith.addf %45, %46 : vector<8x32xf32>
    %48 = math.tanh %47 : vector<8x32xf32>
    %49 = arith.mulf %44, %48 : vector<8x32xf32>
    %c0_22 = arith.constant 0 : index
    %c0_23 = arith.constant 0 : index
    %50 = vector.load %arg14[%c0_22, %c0_23] : memref<64x32xf32, #tpu.memory_space<vmem>>, vector<8x32xf32>
    tpu.vector_store %arg14[%c0_22, %c0_23], %49 {strides = array<i32>} : memref<64x32xf32, #tpu.memory_space<vmem>>, vector<8x32xf32>,
    %c8 = arith.constant 8 : index
    %c0_24 = arith.constant 0 : index
    %51 = vector.load %arg16[%c8, %c0_24] : memref<64x128xf32, #tpu.memory_space<vmem>>, vector<8x128xf32>
    %cst_25 = arith.constant dense<0.000000e+00> : vector<8x128xf32>
    %52 = tpu.matmul %49, %32, %cst_25 {dimension_numbers = #tpu.dot_dimension_numbers<[1], [0], [0], [1], [0, 0, 1, 1], [], []>} : vector<8x32xf32>, vector<32x128xf32>, vector<8x128xf32> -> vector<8x128xf32>
    %53 = arith.addf %51, %52 : vector<8x128xf32>
    %54 = math.tanh %53 : vector<8x128xf32>
    %55 = arith.mulf %17, %54 : vector<8x128xf32>
    %56 = arith.addf %55, %20 : vector<8x128xf32>
    %57 = vector.extract_strided_slice %56 {offsets = [0, 0], sizes = [8, 32], strides = [1, 1]} : vector<8x128xf32> to vector<8x32xf32>
    %58 = vector.extract_strided_slice %56 {offsets = [0, 32], sizes = [8, 32], strides = [1, 1]} : vector<8x128xf32> to vector<8x32xf32>
    %59 = vector.extract_strided_slice %56 {offsets = [0, 64], sizes = [8, 32], strides = [1, 1]} : vector<8x128xf32> to vector<8x32xf32>
    %60 = vector.extract_strided_slice %56 {offsets = [0, 96], sizes = [8, 32], strides = [1, 1]} : vector<8x128xf32> to vector<8x32xf32>
    %61 = arith.mulf %58, %47 : vector<8x32xf32>
    %62 = arith.mulf %57, %59 : vector<8x32xf32>
    %63 = arith.addf %61, %62 : vector<8x32xf32>
    %64 = math.tanh %63 : vector<8x32xf32>
    %65 = arith.mulf %60, %64 : vector<8x32xf32>
    %c8_26 = arith.constant 8 : index
    %c0_27 = arith.constant 0 : index
    %66 = vector.load %arg14[%c8_26, %c0_27] : memref<64x32xf32, #tpu.memory_space<vmem>>, vector<8x32xf32>
    tpu.vector_store %arg14[%c8_26, %c0_27], %65 {strides = array<i32>} : memref<64x32xf32, #tpu.memory_space<vmem>>, vector<8x32xf32>,
    %c16 = arith.constant 16 : index
    %c0_28 = arith.constant 0 : index
    %67 = vector.load %arg16[%c16, %c0_28] : memref<64x128xf32, #tpu.memory_space<vmem>>, vector<8x128xf32>
    %cst_29 = arith.constant dense<0.000000e+00> : vector<8x128xf32>
    %68 = tpu.matmul %65, %32, %cst_29 {dimension_numbers = #tpu.dot_dimension_numbers<[1], [0], [0], [1], [0, 0, 1, 1], [], []>} : vector<8x32xf32>, vector<32x128xf32>, vector<8x128xf32> -> vector<8x128xf32>
    %69 = arith.addf %67, %68 : vector<8x128xf32>
    %70 = math.tanh %69 : vector<8x128xf32>
    %71 = arith.mulf %17, %70 : vector<8x128xf32>
    %72 = arith.addf %71, %20 : vector<8x128xf32>
    %73 = vector.extract_strided_slice %72 {offsets = [0, 0], sizes = [8, 32], strides = [1, 1]} : vector<8x128xf32> to vector<8x32xf32>
    %74 = vector.extract_strided_slice %72 {offsets = [0, 32], sizes = [8, 32], strides = [1, 1]} : vector<8x128xf32> to vector<8x32xf32>
    %75 = vector.extract_strided_slice %72 {offsets = [0, 64], sizes = [8, 32], strides = [1, 1]} : vector<8x128xf32> to vector<8x32xf32>
    %76 = vector.extract_strided_slice %72 {offsets = [0, 96], sizes = [8, 32], strides = [1, 1]} : vector<8x128xf32> to vector<8x32xf32>
    %77 = arith.mulf %74, %63 : vector<8x32xf32>
    %78 = arith.mulf %73, %75 : vector<8x32xf32>
    %79 = arith.addf %77, %78 : vector<8x32xf32>
    %80 = math.tanh %79 : vector<8x32xf32>
    %81 = arith.mulf %76, %80 : vector<8x32xf32>
    %c16_30 = arith.constant 16 : index
    %c0_31 = arith.constant 0 : index
    %82 = vector.load %arg14[%c16_30, %c0_31] : memref<64x32xf32, #tpu.memory_space<vmem>>, vector<8x32xf32>
    tpu.vector_store %arg14[%c16_30, %c0_31], %81 {strides = array<i32>} : memref<64x32xf32, #tpu.memory_space<vmem>>, vector<8x32xf32>,
    %c24 = arith.constant 24 : index
    %c0_32 = arith.constant 0 : index
    %83 = vector.load %arg16[%c24, %c0_32] : memref<64x128xf32, #tpu.memory_space<vmem>>, vector<8x128xf32>
    %cst_33 = arith.constant dense<0.000000e+00> : vector<8x128xf32>
    %84 = tpu.matmul %81, %32, %cst_33 {dimension_numbers = #tpu.dot_dimension_numbers<[1], [0], [0], [1], [0, 0, 1, 1], [], []>} : vector<8x32xf32>, vector<32x128xf32>, vector<8x128xf32> -> vector<8x128xf32>
    %85 = arith.addf %83, %84 : vector<8x128xf32>
    %86 = math.tanh %85 : vector<8x128xf32>
    %87 = arith.mulf %17, %86 : vector<8x128xf32>
    %88 = arith.addf %87, %20 : vector<8x128xf32>
    %89 = vector.extract_strided_slice %88 {offsets = [0, 0], sizes = [8, 32], strides = [1, 1]} : vector<8x128xf32> to vector<8x32xf32>
    %90 = vector.extract_strided_slice %88 {offsets = [0, 32], sizes = [8, 32], strides = [1, 1]} : vector<8x128xf32> to vector<8x32xf32>
    %91 = vector.extract_strided_slice %88 {offsets = [0, 64], sizes = [8, 32], strides = [1, 1]} : vector<8x128xf32> to vector<8x32xf32>
    %92 = vector.extract_strided_slice %88 {offsets = [0, 96], sizes = [8, 32], strides = [1, 1]} : vector<8x128xf32> to vector<8x32xf32>
    %93 = arith.mulf %90, %79 : vector<8x32xf32>
    %94 = arith.mulf %89, %91 : vector<8x32xf32>
    %95 = arith.addf %93, %94 : vector<8x32xf32>
    %96 = math.tanh %95 : vector<8x32xf32>
    %97 = arith.mulf %92, %96 : vector<8x32xf32>
    %c24_34 = arith.constant 24 : index
    %c0_35 = arith.constant 0 : index
    %98 = vector.load %arg14[%c24_34, %c0_35] : memref<64x32xf32, #tpu.memory_space<vmem>>, vector<8x32xf32>
    tpu.vector_store %arg14[%c24_34, %c0_35], %97 {strides = array<i32>} : memref<64x32xf32, #tpu.memory_space<vmem>>, vector<8x32xf32>,
    %c32 = arith.constant 32 : index
    %c0_36 = arith.constant 0 : index
    %99 = vector.load %arg16[%c32, %c0_36] : memref<64x128xf32, #tpu.memory_space<vmem>>, vector<8x128xf32>
    %cst_37 = arith.constant dense<0.000000e+00> : vector<8x128xf32>
    %100 = tpu.matmul %97, %32, %cst_37 {dimension_numbers = #tpu.dot_dimension_numbers<[1], [0], [0], [1], [0, 0, 1, 1], [], []>} : vector<8x32xf32>, vector<32x128xf32>, vector<8x128xf32> -> vector<8x128xf32>
    %101 = arith.addf %99, %100 : vector<8x128xf32>
    %102 = math.tanh %101 : vector<8x128xf32>
    %103 = arith.mulf %17, %102 : vector<8x128xf32>
    %104 = arith.addf %103, %20 : vector<8x128xf32>
    %105 = vector.extract_strided_slice %104 {offsets = [0, 0], sizes = [8, 32], strides = [1, 1]} : vector<8x128xf32> to vector<8x32xf32>
    %106 = vector.extract_strided_slice %104 {offsets = [0, 32], sizes = [8, 32], strides = [1, 1]} : vector<8x128xf32> to vector<8x32xf32>
    %107 = vector.extract_strided_slice %104 {offsets = [0, 64], sizes = [8, 32], strides = [1, 1]} : vector<8x128xf32> to vector<8x32xf32>
    %108 = vector.extract_strided_slice %104 {offsets = [0, 96], sizes = [8, 32], strides = [1, 1]} : vector<8x128xf32> to vector<8x32xf32>
    %109 = arith.mulf %106, %95 : vector<8x32xf32>
    %110 = arith.mulf %105, %107 : vector<8x32xf32>
    %111 = arith.addf %109, %110 : vector<8x32xf32>
    %112 = math.tanh %111 : vector<8x32xf32>
    %113 = arith.mulf %108, %112 : vector<8x32xf32>
    %c32_38 = arith.constant 32 : index
    %c0_39 = arith.constant 0 : index
    %114 = vector.load %arg14[%c32_38, %c0_39] : memref<64x32xf32, #tpu.memory_space<vmem>>, vector<8x32xf32>
    tpu.vector_store %arg14[%c32_38, %c0_39], %113 {strides = array<i32>} : memref<64x32xf32, #tpu.memory_space<vmem>>, vector<8x32xf32>,
    %c40 = arith.constant 40 : index
    %c0_40 = arith.constant 0 : index
    %115 = vector.load %arg16[%c40, %c0_40] : memref<64x128xf32, #tpu.memory_space<vmem>>, vector<8x128xf32>
    %cst_41 = arith.constant dense<0.000000e+00> : vector<8x128xf32>
    %116 = tpu.matmul %113, %32, %cst_41 {dimension_numbers = #tpu.dot_dimension_numbers<[1], [0], [0], [1], [0, 0, 1, 1], [], []>} : vector<8x32xf32>, vector<32x128xf32>, vector<8x128xf32> -> vector<8x128xf32>
    %117 = arith.addf %115, %116 : vector<8x128xf32>
    %118 = math.tanh %117 : vector<8x128xf32>
    %119 = arith.mulf %17, %118 : vector<8x128xf32>
    %120 = arith.addf %119, %20 : vector<8x128xf32>
    %121 = vector.extract_strided_slice %120 {offsets = [0, 0], sizes = [8, 32], strides = [1, 1]} : vector<8x128xf32> to vector<8x32xf32>
    %122 = vector.extract_strided_slice %120 {offsets = [0, 32], sizes = [8, 32], strides = [1, 1]} : vector<8x128xf32> to vector<8x32xf32>
    %123 = vector.extract_strided_slice %120 {offsets = [0, 64], sizes = [8, 32], strides = [1, 1]} : vector<8x128xf32> to vector<8x32xf32>
    %124 = vector.extract_strided_slice %120 {offsets = [0, 96], sizes = [8, 32], strides = [1, 1]} : vector<8x128xf32> to vector<8x32xf32>
    %125 = arith.mulf %122, %111 : vector<8x32xf32>
    %126 = arith.mulf %121, %123 : vector<8x32xf32>
    %127 = arith.addf %125, %126 : vector<8x32xf32>
    %128 = math.tanh %127 : vector<8x32xf32>
    %129 = arith.mulf %124, %128 : vector<8x32xf32>
    %c40_42 = arith.constant 40 : index
    %c0_43 = arith.constant 0 : index
    %130 = vector.load %arg14[%c40_42, %c0_43] : memref<64x32xf32, #tpu.memory_space<vmem>>, vector<8x32xf32>
    tpu.vector_store %arg14[%c40_42, %c0_43], %129 {strides = array<i32>} : memref<64x32xf32, #tpu.memory_space<vmem>>, vector<8x32xf32>,
    %c48 = arith.constant 48 : index
    %c0_44 = arith.constant 0 : index
    %131 = vector.load %arg16[%c48, %c0_44] : memref<64x128xf32, #tpu.memory_space<vmem>>, vector<8x128xf32>
    %cst_45 = arith.constant dense<0.000000e+00> : vector<8x128xf32>
    %132 = tpu.matmul %129, %32, %cst_45 {dimension_numbers = #tpu.dot_dimension_numbers<[1], [0], [0], [1], [0, 0, 1, 1], [], []>} : vector<8x32xf32>, vector<32x128xf32>, vector<8x128xf32> -> vector<8x128xf32>
    %133 = arith.addf %131, %132 : vector<8x128xf32>
    %134 = math.tanh %133 : vector<8x128xf32>
    %135 = arith.mulf %17, %134 : vector<8x128xf32>
    %136 = arith.addf %135, %20 : vector<8x128xf32>
    %137 = vector.extract_strided_slice %136 {offsets = [0, 0], sizes = [8, 32], strides = [1, 1]} : vector<8x128xf32> to vector<8x32xf32>
    %138 = vector.extract_strided_slice %136 {offsets = [0, 32], sizes = [8, 32], strides = [1, 1]} : vector<8x128xf32> to vector<8x32xf32>
    %139 = vector.extract_strided_slice %136 {offsets = [0, 64], sizes = [8, 32], strides = [1, 1]} : vector<8x128xf32> to vector<8x32xf32>
    %140 = vector.extract_strided_slice %136 {offsets = [0, 96], sizes = [8, 32], strides = [1, 1]} : vector<8x128xf32> to vector<8x32xf32>
    %141 = arith.mulf %138, %127 : vector<8x32xf32>
    %142 = arith.mulf %137, %139 : vector<8x32xf32>
    %143 = arith.addf %141, %142 : vector<8x32xf32>
    %144 = math.tanh %143 : vector<8x32xf32>
    %145 = arith.mulf %140, %144 : vector<8x32xf32>
    %c48_46 = arith.constant 48 : index
    %c0_47 = arith.constant 0 : index
    %146 = vector.load %arg14[%c48_46, %c0_47] : memref<64x32xf32, #tpu.memory_space<vmem>>, vector<8x32xf32>
    tpu.vector_store %arg14[%c48_46, %c0_47], %145 {strides = array<i32>} : memref<64x32xf32, #tpu.memory_space<vmem>>, vector<8x32xf32>,
    %c56 = arith.constant 56 : index
    %c0_48 = arith.constant 0 : index
    %147 = vector.load %arg16[%c56, %c0_48] : memref<64x128xf32, #tpu.memory_space<vmem>>, vector<8x128xf32>
    %cst_49 = arith.constant dense<0.000000e+00> : vector<8x128xf32>
    %148 = tpu.matmul %145, %32, %cst_49 {dimension_numbers = #tpu.dot_dimension_numbers<[1], [0], [0], [1], [0, 0, 1, 1], [], []>} : vector<8x32xf32>, vector<32x128xf32>, vector<8x128xf32> -> vector<8x128xf32>
    %149 = arith.addf %147, %148 : vector<8x128xf32>
    %150 = math.tanh %149 : vector<8x128xf32>
    %151 = arith.mulf %17, %150 : vector<8x128xf32>
    %152 = arith.addf %151, %20 : vector<8x128xf32>
    %153 = vector.extract_strided_slice %152 {offsets = [0, 0], sizes = [8, 32], strides = [1, 1]} : vector<8x128xf32> to vector<8x32xf32>
    %154 = vector.extract_strided_slice %152 {offsets = [0, 32], sizes = [8, 32], strides = [1, 1]} : vector<8x128xf32> to vector<8x32xf32>
    %155 = vector.extract_strided_slice %152 {offsets = [0, 64], sizes = [8, 32], strides = [1, 1]} : vector<8x128xf32> to vector<8x32xf32>
    %156 = vector.extract_strided_slice %152 {offsets = [0, 96], sizes = [8, 32], strides = [1, 1]} : vector<8x128xf32> to vector<8x32xf32>
    %157 = arith.mulf %154, %143 : vector<8x32xf32>
    %158 = arith.mulf %153, %155 : vector<8x32xf32>
    %159 = arith.addf %157, %158 : vector<8x32xf32>
    %160 = math.tanh %159 : vector<8x32xf32>
    %161 = arith.mulf %156, %160 : vector<8x32xf32>
    %c56_50 = arith.constant 56 : index
    %c0_51 = arith.constant 0 : index
    %162 = vector.load %arg14[%c56_50, %c0_51] : memref<64x32xf32, #tpu.memory_space<vmem>>, vector<8x32xf32>
    tpu.vector_store %arg14[%c56_50, %c0_51], %161 {strides = array<i32>} : memref<64x32xf32, #tpu.memory_space<vmem>>, vector<8x32xf32>,
    %c0_52 = arith.constant 0 : index
    %c0_53 = arith.constant 0 : index
    %163 = vector.load %arg4[%c0_52, %c0_53] : memref<32x128xf32, #tpu.memory_space<vmem>>, vector<32x128xf32>
    %c0_54 = arith.constant 0 : index
    %c0_55 = arith.constant 0 : index
    %164 = vector.load %arg5[%c0_54, %c0_55] : memref<32x128xf32, #tpu.memory_space<vmem>>, vector<32x128xf32>
    %c0_56 = arith.constant 0 : index
    %c0_57 = arith.constant 0 : index
    %165 = vector.load %arg6[%c0_56, %c0_57] : memref<1x128xf32, #tpu.memory_space<vmem>>, vector<1x128xf32>
    %c0_58 = arith.constant 0 : index
    %c0_59 = arith.constant 0 : index
    %166 = vector.load %arg14[%c0_58, %c0_59] : memref<64x32xf32, #tpu.memory_space<vmem>>, vector<64x32xf32>
    %cst_60 = arith.constant dense<0.000000e+00> : vector<64x128xf32>
    %167 = tpu.matmul %166, %163, %cst_60 {dimension_numbers = #tpu.dot_dimension_numbers<[1], [0], [0], [1], [0, 0, 1, 1], [], []>} : vector<64x32xf32>, vector<32x128xf32>, vector<64x128xf32> -> vector<64x128xf32>
    %168 = vector.broadcast %165 : vector<1x128xf32> to vector<64x128xf32>
    %169 = arith.addf %167, %168 : vector<64x128xf32>
    %170 = vector.broadcast %8 : vector<1x128xf32> to vector<64x128xf32>
    %171 = arith.mulf %169, %170 : vector<64x128xf32>
    %c0_61 = arith.constant 0 : index
    %c0_62 = arith.constant 0 : index
    %172 = vector.load %arg16[%c0_61, %c0_62] : memref<64x128xf32, #tpu.memory_space<vmem>>, vector<64x128xf32>
    tpu.vector_store %arg16[%c0_61, %c0_62], %171 {strides = array<i32>} : memref<64x128xf32, #tpu.memory_space<vmem>>, vector<64x128xf32>,
    %173 = vector.broadcast %8 : vector<1x128xf32> to vector<32x128xf32>
    %174 = arith.mulf %164, %173 : vector<32x128xf32>
    %cst_63 = arith.constant 0.000000e+00 : f32
    %175 = vector.broadcast %cst_63 : f32 to vector<8x32xf32>
    %cst_64 = arith.constant 0.000000e+00 : f32
    %176 = vector.broadcast %cst_64 : f32 to vector<8x32xf32>
    %c0_65 = arith.constant 0 : index
    %c0_66 = arith.constant 0 : index
    %177 = vector.load %arg16[%c0_65, %c0_66] : memref<64x128xf32, #tpu.memory_space<vmem>>, vector<8x128xf32>
    %cst_67 = arith.constant dense<0.000000e+00> : vector<8x128xf32>
    %178 = tpu.matmul %175, %174, %cst_67 {dimension_numbers = #tpu.dot_dimension_numbers<[1], [0], [0], [1], [0, 0, 1, 1], [], []>} : vector<8x32xf32>, vector<32x128xf32>, vector<8x128xf32> -> vector<8x128xf32>
    %179 = arith.addf %177, %178 : vector<8x128xf32>
    %180 = math.tanh %179 : vector<8x128xf32>
    %181 = arith.mulf %17, %180 : vector<8x128xf32>
    %182 = arith.addf %181, %20 : vector<8x128xf32>
    %183 = vector.extract_strided_slice %182 {offsets = [0, 0], sizes = [8, 32], strides = [1, 1]} : vector<8x128xf32> to vector<8x32xf32>
    %184 = vector.extract_strided_slice %182 {offsets = [0, 32], sizes = [8, 32], strides = [1, 1]} : vector<8x128xf32> to vector<8x32xf32>
    %185 = vector.extract_strided_slice %182 {offsets = [0, 64], sizes = [8, 32], strides = [1, 1]} : vector<8x128xf32> to vector<8x32xf32>
    %186 = vector.extract_strided_slice %182 {offsets = [0, 96], sizes = [8, 32], strides = [1, 1]} : vector<8x128xf32> to vector<8x32xf32>
    %187 = arith.mulf %184, %176 : vector<8x32xf32>
    %188 = arith.mulf %183, %185 : vector<8x32xf32>
    %189 = arith.addf %187, %188 : vector<8x32xf32>
    %190 = math.tanh %189 : vector<8x32xf32>
    %191 = arith.mulf %186, %190 : vector<8x32xf32>
    %c0_68 = arith.constant 0 : index
    %c0_69 = arith.constant 0 : index
    %192 = vector.load %arg15[%c0_68, %c0_69] : memref<64x32xf32, #tpu.memory_space<vmem>>, vector<8x32xf32>
    tpu.vector_store %arg15[%c0_68, %c0_69], %191 {strides = array<i32>} : memref<64x32xf32, #tpu.memory_space<vmem>>, vector<8x32xf32>,
    %c8_70 = arith.constant 8 : index
    %c0_71 = arith.constant 0 : index
    %193 = vector.load %arg16[%c8_70, %c0_71] : memref<64x128xf32, #tpu.memory_space<vmem>>, vector<8x128xf32>
    %cst_72 = arith.constant dense<0.000000e+00> : vector<8x128xf32>
    %194 = tpu.matmul %191, %174, %cst_72 {dimension_numbers = #tpu.dot_dimension_numbers<[1], [0], [0], [1], [0, 0, 1, 1], [], []>} : vector<8x32xf32>, vector<32x128xf32>, vector<8x128xf32> -> vector<8x128xf32>
    %195 = arith.addf %193, %194 : vector<8x128xf32>
    %196 = math.tanh %195 : vector<8x128xf32>
    %197 = arith.mulf %17, %196 : vector<8x128xf32>
    %198 = arith.addf %197, %20 : vector<8x128xf32>
    %199 = vector.extract_strided_slice %198 {offsets = [0, 0], sizes = [8, 32], strides = [1, 1]} : vector<8x128xf32> to vector<8x32xf32>
    %200 = vector.extract_strided_slice %198 {offsets = [0, 32], sizes = [8, 32], strides = [1, 1]} : vector<8x128xf32> to vector<8x32xf32>
    %201 = vector.extract_strided_slice %198 {offsets = [0, 64], sizes = [8, 32], strides = [1, 1]} : vector<8x128xf32> to vector<8x32xf32>
    %202 = vector.extract_strided_slice %198 {offsets = [0, 96], sizes = [8, 32], strides = [1, 1]} : vector<8x128xf32> to vector<8x32xf32>
    %203 = arith.mulf %200, %189 : vector<8x32xf32>
    %204 = arith.mulf %199, %201 : vector<8x32xf32>
    %205 = arith.addf %203, %204 : vector<8x32xf32>
    %206 = math.tanh %205 : vector<8x32xf32>
    %207 = arith.mulf %202, %206 : vector<8x32xf32>
    %c8_73 = arith.constant 8 : index
    %c0_74 = arith.constant 0 : index
    %208 = vector.load %arg15[%c8_73, %c0_74] : memref<64x32xf32, #tpu.memory_space<vmem>>, vector<8x32xf32>
    tpu.vector_store %arg15[%c8_73, %c0_74], %207 {strides = array<i32>} : memref<64x32xf32, #tpu.memory_space<vmem>>, vector<8x32xf32>,
    %c16_75 = arith.constant 16 : index
    %c0_76 = arith.constant 0 : index
    %209 = vector.load %arg16[%c16_75, %c0_76] : memref<64x128xf32, #tpu.memory_space<vmem>>, vector<8x128xf32>
    %cst_77 = arith.constant dense<0.000000e+00> : vector<8x128xf32>
    %210 = tpu.matmul %207, %174, %cst_77 {dimension_numbers = #tpu.dot_dimension_numbers<[1], [0], [0], [1], [0, 0, 1, 1], [], []>} : vector<8x32xf32>, vector<32x128xf32>, vector<8x128xf32> -> vector<8x128xf32>
    %211 = arith.addf %209, %210 : vector<8x128xf32>
    %212 = math.tanh %211 : vector<8x128xf32>
    %213 = arith.mulf %17, %212 : vector<8x128xf32>
    %214 = arith.addf %213, %20 : vector<8x128xf32>
    %215 = vector.extract_strided_slice %214 {offsets = [0, 0], sizes = [8, 32], strides = [1, 1]} : vector<8x128xf32> to vector<8x32xf32>
    %216 = vector.extract_strided_slice %214 {offsets = [0, 32], sizes = [8, 32], strides = [1, 1]} : vector<8x128xf32> to vector<8x32xf32>
    %217 = vector.extract_strided_slice %214 {offsets = [0, 64], sizes = [8, 32], strides = [1, 1]} : vector<8x128xf32> to vector<8x32xf32>
    %218 = vector.extract_strided_slice %214 {offsets = [0, 96], sizes = [8, 32], strides = [1, 1]} : vector<8x128xf32> to vector<8x32xf32>
    %219 = arith.mulf %216, %205 : vector<8x32xf32>
    %220 = arith.mulf %215, %217 : vector<8x32xf32>
    %221 = arith.addf %219, %220 : vector<8x32xf32>
    %222 = math.tanh %221 : vector<8x32xf32>
    %223 = arith.mulf %218, %222 : vector<8x32xf32>
    %c16_78 = arith.constant 16 : index
    %c0_79 = arith.constant 0 : index
    %224 = vector.load %arg15[%c16_78, %c0_79] : memref<64x32xf32, #tpu.memory_space<vmem>>, vector<8x32xf32>
    tpu.vector_store %arg15[%c16_78, %c0_79], %223 {strides = array<i32>} : memref<64x32xf32, #tpu.memory_space<vmem>>, vector<8x32xf32>,
    %c24_80 = arith.constant 24 : index
    %c0_81 = arith.constant 0 : index
    %225 = vector.load %arg16[%c24_80, %c0_81] : memref<64x128xf32, #tpu.memory_space<vmem>>, vector<8x128xf32>
    %cst_82 = arith.constant dense<0.000000e+00> : vector<8x128xf32>
    %226 = tpu.matmul %223, %174, %cst_82 {dimension_numbers = #tpu.dot_dimension_numbers<[1], [0], [0], [1], [0, 0, 1, 1], [], []>} : vector<8x32xf32>, vector<32x128xf32>, vector<8x128xf32> -> vector<8x128xf32>
    %227 = arith.addf %225, %226 : vector<8x128xf32>
    %228 = math.tanh %227 : vector<8x128xf32>
    %229 = arith.mulf %17, %228 : vector<8x128xf32>
    %230 = arith.addf %229, %20 : vector<8x128xf32>
    %231 = vector.extract_strided_slice %230 {offsets = [0, 0], sizes = [8, 32], strides = [1, 1]} : vector<8x128xf32> to vector<8x32xf32>
    %232 = vector.extract_strided_slice %230 {offsets = [0, 32], sizes = [8, 32], strides = [1, 1]} : vector<8x128xf32> to vector<8x32xf32>
    %233 = vector.extract_strided_slice %230 {offsets = [0, 64], sizes = [8, 32], strides = [1, 1]} : vector<8x128xf32> to vector<8x32xf32>
    %234 = vector.extract_strided_slice %230 {offsets = [0, 96], sizes = [8, 32], strides = [1, 1]} : vector<8x128xf32> to vector<8x32xf32>
    %235 = arith.mulf %232, %221 : vector<8x32xf32>
    %236 = arith.mulf %231, %233 : vector<8x32xf32>
    %237 = arith.addf %235, %236 : vector<8x32xf32>
    %238 = math.tanh %237 : vector<8x32xf32>
    %239 = arith.mulf %234, %238 : vector<8x32xf32>
    %c24_83 = arith.constant 24 : index
    %c0_84 = arith.constant 0 : index
    %240 = vector.load %arg15[%c24_83, %c0_84] : memref<64x32xf32, #tpu.memory_space<vmem>>, vector<8x32xf32>
    tpu.vector_store %arg15[%c24_83, %c0_84], %239 {strides = array<i32>} : memref<64x32xf32, #tpu.memory_space<vmem>>, vector<8x32xf32>,
    %c32_85 = arith.constant 32 : index
    %c0_86 = arith.constant 0 : index
    %241 = vector.load %arg16[%c32_85, %c0_86] : memref<64x128xf32, #tpu.memory_space<vmem>>, vector<8x128xf32>
    %cst_87 = arith.constant dense<0.000000e+00> : vector<8x128xf32>
    %242 = tpu.matmul %239, %174, %cst_87 {dimension_numbers = #tpu.dot_dimension_numbers<[1], [0], [0], [1], [0, 0, 1, 1], [], []>} : vector<8x32xf32>, vector<32x128xf32>, vector<8x128xf32> -> vector<8x128xf32>
    %243 = arith.addf %241, %242 : vector<8x128xf32>
    %244 = math.tanh %243 : vector<8x128xf32>
    %245 = arith.mulf %17, %244 : vector<8x128xf32>
    %246 = arith.addf %245, %20 : vector<8x128xf32>
    %247 = vector.extract_strided_slice %246 {offsets = [0, 0], sizes = [8, 32], strides = [1, 1]} : vector<8x128xf32> to vector<8x32xf32>
    %248 = vector.extract_strided_slice %246 {offsets = [0, 32], sizes = [8, 32], strides = [1, 1]} : vector<8x128xf32> to vector<8x32xf32>
    %249 = vector.extract_strided_slice %246 {offsets = [0, 64], sizes = [8, 32], strides = [1, 1]} : vector<8x128xf32> to vector<8x32xf32>
    %250 = vector.extract_strided_slice %246 {offsets = [0, 96], sizes = [8, 32], strides = [1, 1]} : vector<8x128xf32> to vector<8x32xf32>
    %251 = arith.mulf %248, %237 : vector<8x32xf32>
    %252 = arith.mulf %247, %249 : vector<8x32xf32>
    %253 = arith.addf %251, %252 : vector<8x32xf32>
    %254 = math.tanh %253 : vector<8x32xf32>
    %255 = arith.mulf %250, %254 : vector<8x32xf32>
    %c32_88 = arith.constant 32 : index
    %c0_89 = arith.constant 0 : index
    %256 = vector.load %arg15[%c32_88, %c0_89] : memref<64x32xf32, #tpu.memory_space<vmem>>, vector<8x32xf32>
    tpu.vector_store %arg15[%c32_88, %c0_89], %255 {strides = array<i32>} : memref<64x32xf32, #tpu.memory_space<vmem>>, vector<8x32xf32>,
    %c40_90 = arith.constant 40 : index
    %c0_91 = arith.constant 0 : index
    %257 = vector.load %arg16[%c40_90, %c0_91] : memref<64x128xf32, #tpu.memory_space<vmem>>, vector<8x128xf32>
    %cst_92 = arith.constant dense<0.000000e+00> : vector<8x128xf32>
    %258 = tpu.matmul %255, %174, %cst_92 {dimension_numbers = #tpu.dot_dimension_numbers<[1], [0], [0], [1], [0, 0, 1, 1], [], []>} : vector<8x32xf32>, vector<32x128xf32>, vector<8x128xf32> -> vector<8x128xf32>
    %259 = arith.addf %257, %258 : vector<8x128xf32>
    %260 = math.tanh %259 : vector<8x128xf32>
    %261 = arith.mulf %17, %260 : vector<8x128xf32>
    %262 = arith.addf %261, %20 : vector<8x128xf32>
    %263 = vector.extract_strided_slice %262 {offsets = [0, 0], sizes = [8, 32], strides = [1, 1]} : vector<8x128xf32> to vector<8x32xf32>
    %264 = vector.extract_strided_slice %262 {offsets = [0, 32], sizes = [8, 32], strides = [1, 1]} : vector<8x128xf32> to vector<8x32xf32>
    %265 = vector.extract_strided_slice %262 {offsets = [0, 64], sizes = [8, 32], strides = [1, 1]} : vector<8x128xf32> to vector<8x32xf32>
    %266 = vector.extract_strided_slice %262 {offsets = [0, 96], sizes = [8, 32], strides = [1, 1]} : vector<8x128xf32> to vector<8x32xf32>
    %267 = arith.mulf %264, %253 : vector<8x32xf32>
    %268 = arith.mulf %263, %265 : vector<8x32xf32>
    %269 = arith.addf %267, %268 : vector<8x32xf32>
    %270 = math.tanh %269 : vector<8x32xf32>
    %271 = arith.mulf %266, %270 : vector<8x32xf32>
    %c40_93 = arith.constant 40 : index
    %c0_94 = arith.constant 0 : index
    %272 = vector.load %arg15[%c40_93, %c0_94] : memref<64x32xf32, #tpu.memory_space<vmem>>, vector<8x32xf32>
    tpu.vector_store %arg15[%c40_93, %c0_94], %271 {strides = array<i32>} : memref<64x32xf32, #tpu.memory_space<vmem>>, vector<8x32xf32>,
    %c48_95 = arith.constant 48 : index
    %c0_96 = arith.constant 0 : index
    %273 = vector.load %arg16[%c48_95, %c0_96] : memref<64x128xf32, #tpu.memory_space<vmem>>, vector<8x128xf32>
    %cst_97 = arith.constant dense<0.000000e+00> : vector<8x128xf32>
    %274 = tpu.matmul %271, %174, %cst_97 {dimension_numbers = #tpu.dot_dimension_numbers<[1], [0], [0], [1], [0, 0, 1, 1], [], []>} : vector<8x32xf32>, vector<32x128xf32>, vector<8x128xf32> -> vector<8x128xf32>
    %275 = arith.addf %273, %274 : vector<8x128xf32>
    %276 = math.tanh %275 : vector<8x128xf32>
    %277 = arith.mulf %17, %276 : vector<8x128xf32>
    %278 = arith.addf %277, %20 : vector<8x128xf32>
    %279 = vector.extract_strided_slice %278 {offsets = [0, 0], sizes = [8, 32], strides = [1, 1]} : vector<8x128xf32> to vector<8x32xf32>
    %280 = vector.extract_strided_slice %278 {offsets = [0, 32], sizes = [8, 32], strides = [1, 1]} : vector<8x128xf32> to vector<8x32xf32>
    %281 = vector.extract_strided_slice %278 {offsets = [0, 64], sizes = [8, 32], strides = [1, 1]} : vector<8x128xf32> to vector<8x32xf32>
    %282 = vector.extract_strided_slice %278 {offsets = [0, 96], sizes = [8, 32], strides = [1, 1]} : vector<8x128xf32> to vector<8x32xf32>
    %283 = arith.mulf %280, %269 : vector<8x32xf32>
    %284 = arith.mulf %279, %281 : vector<8x32xf32>
    %285 = arith.addf %283, %284 : vector<8x32xf32>
    %286 = math.tanh %285 : vector<8x32xf32>
    %287 = arith.mulf %282, %286 : vector<8x32xf32>
    %c48_98 = arith.constant 48 : index
    %c0_99 = arith.constant 0 : index
    %288 = vector.load %arg15[%c48_98, %c0_99] : memref<64x32xf32, #tpu.memory_space<vmem>>, vector<8x32xf32>
    tpu.vector_store %arg15[%c48_98, %c0_99], %287 {strides = array<i32>} : memref<64x32xf32, #tpu.memory_space<vmem>>, vector<8x32xf32>,
    %c56_100 = arith.constant 56 : index
    %c0_101 = arith.constant 0 : index
    %289 = vector.load %arg16[%c56_100, %c0_101] : memref<64x128xf32, #tpu.memory_space<vmem>>, vector<8x128xf32>
    %cst_102 = arith.constant dense<0.000000e+00> : vector<8x128xf32>
    %290 = tpu.matmul %287, %174, %cst_102 {dimension_numbers = #tpu.dot_dimension_numbers<[1], [0], [0], [1], [0, 0, 1, 1], [], []>} : vector<8x32xf32>, vector<32x128xf32>, vector<8x128xf32> -> vector<8x128xf32>
    %291 = arith.addf %289, %290 : vector<8x128xf32>
    %292 = math.tanh %291 : vector<8x128xf32>
    %293 = arith.mulf %17, %292 : vector<8x128xf32>
    %294 = arith.addf %293, %20 : vector<8x128xf32>
    %295 = vector.extract_strided_slice %294 {offsets = [0, 0], sizes = [8, 32], strides = [1, 1]} : vector<8x128xf32> to vector<8x32xf32>
    %296 = vector.extract_strided_slice %294 {offsets = [0, 32], sizes = [8, 32], strides = [1, 1]} : vector<8x128xf32> to vector<8x32xf32>
    %297 = vector.extract_strided_slice %294 {offsets = [0, 64], sizes = [8, 32], strides = [1, 1]} : vector<8x128xf32> to vector<8x32xf32>
    %298 = vector.extract_strided_slice %294 {offsets = [0, 96], sizes = [8, 32], strides = [1, 1]} : vector<8x128xf32> to vector<8x32xf32>
    %299 = arith.mulf %296, %285 : vector<8x32xf32>
    %300 = arith.mulf %295, %297 : vector<8x32xf32>
    %301 = arith.addf %299, %300 : vector<8x32xf32>
    %302 = math.tanh %301 : vector<8x32xf32>
    %303 = arith.mulf %298, %302 : vector<8x32xf32>
    %c56_103 = arith.constant 56 : index
    %c0_104 = arith.constant 0 : index
    %304 = vector.load %arg15[%c56_103, %c0_104] : memref<64x32xf32, #tpu.memory_space<vmem>>, vector<8x32xf32>
    tpu.vector_store %arg15[%c56_103, %c0_104], %303 {strides = array<i32>} : memref<64x32xf32, #tpu.memory_space<vmem>>, vector<8x32xf32>,
    %c0_105 = arith.constant 0 : index
    %c0_106 = arith.constant 0 : index
    %305 = vector.load %arg15[%c0_105, %c0_106] : memref<64x32xf32, #tpu.memory_space<vmem>>, vector<64x32xf32>
    %c0_107 = arith.constant 0 : index
    %c0_108 = arith.constant 0 : index
    %306 = vector.load %arg7[%c0_107, %c0_108] : memref<32x32xf32, #tpu.memory_space<vmem>>, vector<32x32xf32>
    %cst_109 = arith.constant dense<0.000000e+00> : vector<64x32xf32>
    %307 = tpu.matmul %305, %306, %cst_109 {dimension_numbers = #tpu.dot_dimension_numbers<[1], [0], [0], [1], [0, 0, 1, 1], [], []>} : vector<64x32xf32>, vector<32x32xf32>, vector<64x32xf32> -> vector<64x32xf32>
    %c0_110 = arith.constant 0 : index
    %c0_111 = arith.constant 0 : index
    %308 = vector.load %arg8[%c0_110, %c0_111] : memref<1x32xf32, #tpu.memory_space<vmem>>, vector<1x32xf32>
    %309 = vector.broadcast %308 : vector<1x32xf32> to vector<64x32xf32>
    %310 = arith.addf %307, %309 : vector<64x32xf32>
    %311 = math.tanh %310 : vector<64x32xf32>
    %c0_112 = arith.constant 0 : index
    %c0_113 = arith.constant 0 : index
    %312 = vector.load %arg9[%c0_112, %c0_113] : memref<32x64xf32, #tpu.memory_space<vmem>>, vector<32x64xf32>
    %cst_114 = arith.constant dense<0.000000e+00> : vector<64x64xf32>
    %313 = tpu.matmul %311, %312, %cst_114 {dimension_numbers = #tpu.dot_dimension_numbers<[1], [0], [0], [1], [0, 0, 1, 1], [], []>} : vector<64x32xf32>, vector<32x64xf32>, vector<64x64xf32> -> vector<64x64xf32>
    %c0_115 = arith.constant 0 : index
    %c0_116 = arith.constant 0 : index
    %314 = vector.load %arg10[%c0_115, %c0_116] : memref<1x64xf32, #tpu.memory_space<vmem>>, vector<1x64xf32>
    %315 = vector.broadcast %314 : vector<1x64xf32> to vector<64x64xf32>
    %316 = arith.addf %313, %315 : vector<64x64xf32>
    %317 = math.tanh %316 : vector<64x64xf32>
    %c0_117 = arith.constant 0 : index
    %c0_118 = arith.constant 0 : index
    %318 = vector.load %arg11[%c0_117, %c0_118] : memref<64x128xf32, #tpu.memory_space<vmem>>, vector<64x128xf32>
    %cst_119 = arith.constant dense<0.000000e+00> : vector<64x128xf32>
    %319 = tpu.matmul %317, %318, %cst_119 {dimension_numbers = #tpu.dot_dimension_numbers<[1], [0], [0], [1], [0, 0, 1, 1], [], []>} : vector<64x64xf32>, vector<64x128xf32>, vector<64x128xf32> -> vector<64x128xf32>
    %c0_120 = arith.constant 0 : index
    %c0_121 = arith.constant 0 : index
    %320 = vector.load %arg12[%c0_120, %c0_121] : memref<1x128xf32, #tpu.memory_space<vmem>>, vector<1x128xf32>
    %321 = vector.broadcast %320 : vector<1x128xf32> to vector<64x128xf32>
    %322 = arith.addf %319, %321 : vector<64x128xf32>
    %cst_122 = arith.constant 0.000000e+00 : f32
    %323 = vector.broadcast %cst_122 : f32 to vector<64x128xf32>
    %324 = arith.maximumf %322, %323 : vector<64x128xf32>
    %c0_123 = arith.constant 0 : index
    %c0_124 = arith.constant 0 : index
    %325 = vector.load %arg13[%c0_123, %c0_124] : memref<64x128xf32, #tpu.memory_space<vmem>>, vector<64x128xf32>
    tpu.vector_store %arg13[%c0_123, %c0_124], %324 {strides = array<i32>} : memref<64x128xf32, #tpu.memory_space<vmem>>, vector<64x128xf32>,
    return
  }
}

</mosaic_0001>

<bundles_post_ra>
// kernel: tpu_custom_call.1
= control target key start
LH: loop header
LB: loop body
LE: loop exit
PB: predicated region body
PF: predicated region fallthrough
CT: control target
= control target key end

     0   :  { %18 = vsyncpa [#allocation6], 0  ;;  %s4012_s0 = inlined_call_operand.vmem [shape: f32[64,16], index: 0, kind: input, shape index: {}]   ;;  %s4013_s1 = inlined_call_operand.vmem [shape: f32[16,128], index: 1, kind: input, shape index: {}]   ;;  %s4014_s2 = inlined_call_operand.vmem [shape: f32[32,128], index: 2, kind: input, shape index: {}]   ;;  %s4015_s3 = inlined_call_operand.vmem [shape: f32[1,128], index: 3, kind: input, shape index: {}]   ;;  %s4016_s4 = inlined_call_operand.hbm [shape: f32[32,128], index: 4, kind: input, shape index: {}]   ;;  %s4017_s5 = inlined_call_operand.hbm [shape: f32[32,128], index: 5, kind: input, shape index: {}]   ;;  %s4018_s6 = inlined_call_operand.vmem [shape: f32[1,128], index: 6, kind: input, shape index: {}]   ;;  %s4019_s7 = inlined_call_operand.hbm [shape: f32[32,32], index: 7, kind: input, shape index: {}]   ;;  %s4020_s8 = inlined_call_operand.vmem [shape: f32[1,32], index: 8, kind: input, shape index: {}]   ;;  %s4021_s9 = inlined_call_operand.hbm [shape: f32[32,64], index: 9, kind: input, shape index: {}]   ;;  %s4022_s10 = inlined_call_operand.vmem [shape: f32[1,64], index: 10, kind: input, shape index: {}]   ;;  %s4023_s11 = inlined_call_operand.vmem [shape: f32[64,128], index: 11, kind: input, shape index: {}]   ;;  %s4024_s12 = inlined_call_operand.vmem [shape: f32[1,128], index: 12, kind: input, shape index: {}]   ;;  %s4025_s13 = inlined_call_operand.hbm [shape: f32[64,128], index: 13, kind: output, shape index: {}]  }
   0x1   :  { %19 = vsyncpa [#allocation9], 0 }
   0x2   :  { %20 = vsyncpa [#allocation12], 0 }
   0x3   :  { %21 = vsyncpa [#allocation7], 0  ;;  %s3368_s25 = smov [#allocation8]   ;;  %s3369_s27 = smov [#allocation5]  }
   0x4   :  { %s47_s26 = sshll.u32 %s3368_s25, 4  ;;  %s35_s28 = sshll.u32 %s3369_s27, 4  ;;  %s48_s26 = int_to_ptr.vmem [resolvable:$true] %s47_s26  ;;  %s3451_s28 = int_to_ptr.vmem [resolvable:$true] %s35_s28 }
   0x5   :  { %s3250_s14 = scalar_lea.hbm %s4017_s5, 512 }
   0x6   :  { %p3251_p0 = scmp.ne.s32.totalorder %s4017_s5, %s3250_s14  ;;  %p3254_p1 = scmp.lt.u32.totalorder %s3250_s14, %s4017_s5 }
   0x8   :  { %p3256_p2 = pnand %p3254_p1, %p3251_p0 }
   0xa   :  { %3259 = shalt.err (!%p3256_p2)
}
   0xb   :  { %s3260_s19 = scalar_lea.vmem %s48_s26, 512  ;;  %p3265_p4 = scmp.lt.s32.totalorder %s48_s26, %s48_s26 }
   0xc   :  { %p3261_p3 = scmp.ne.s32.totalorder %s48_s26, %s3260_s19  ;;  %p3266_p5 = scmp.lt.s32.totalorder %s3260_s19, %s3260_s19 }
   0xe   :  { %p3267_p6 = por %p3266_p5, %p3265_p4 }
  0x10   :  { %p3268_p7 = pnand %p3267_p6, %p3261_p3 }
  0x12   :  { %3271 = shalt.err (!%p3268_p7)
}
  0x13   :  { %s3370_s20 = smov 128   ;;  %s3371_s21 = smov 8  }
  0x14   :  { %53 = dma.hbm_to_vmem [thread:$0]  %s4017_s5, 512, %s48_s26, [#allocation9], %s3370_s20, %s3370_s20, %s3371_s21  }
  0x15   :  { %s3272_s27 = scalar_lea.hbm %s4016_s4, 512 }
  0x16   :  { %p3273_p8 = scmp.ne.s32.totalorder %s4016_s4, %s3272_s27  ;;  %p3276_p9 = scmp.lt.u32.totalorder %s3272_s27, %s4016_s4 }
  0x18   :  { %p3278_p10 = pnand %p3276_p9, %p3273_p8 }
  0x1a   :  { %3281 = shalt.err (!%p3278_p10)
}
  0x1b   :  { %s3282_s16 = scalar_lea.vmem %s3451_s28, 512  ;;  %p3287_p12 = scmp.lt.s32.totalorder %s3451_s28, %s3451_s28 }
  0x1c   :  { %p3283_p11 = scmp.ne.s32.totalorder %s3451_s28, %s3282_s16  ;;  %p3288_p13 = scmp.lt.s32.totalorder %s3282_s16, %s3282_s16 }
  0x1e   :  { %p3289_p0 = por %p3288_p13, %p3287_p12 }
  0x20   :  { %p3290_p1 = pnand %p3289_p0, %p3283_p11 }
  0x22   :  { %3293 = shalt.err (!%p3290_p1)
}
  0x23   :  { %41 = dma.hbm_to_vmem [thread:$0]  %s4016_s4, 512, %s3451_s28, [#allocation6], %s3370_s20, %s3370_s20, %s3371_s21  }
  0x24   :  { %s3372_s17 = smov [#allocation10]   ;;  %s3373_s19 = smov [#allocation11]  }
  0x25   :  { %s61_s18 = sshll.u32 %s3372_s17, 4  ;;  %s75_s22 = sshll.u32 %s3373_s19, 4  ;;  %s62_s18 = int_to_ptr.vmem [resolvable:$true] %s61_s18  ;;  %s3488_s22 = int_to_ptr.vmem [resolvable:$true] %s75_s22 }
  0x26   :  { %s3294_s25 = scalar_lea.hbm %s4019_s7, 512 }
  0x27   :  { %p3295_p2 = scmp.ne.s32.totalorder %s4019_s7, %s3294_s25  ;;  %p3298_p3 = scmp.lt.u32.totalorder %s3294_s25, %s4019_s7 }
  0x29   :  { %p3300_p4 = pnand %p3298_p3, %p3295_p2 }
  0x2b   :  { %3303 = shalt.err (!%p3300_p4)
}
  0x2c   :  { %s3304_s4 = scalar_lea.vmem %s62_s18, 512  ;;  %p3309_p6 = scmp.lt.s32.totalorder %s62_s18, %s62_s18 }
  0x2d   :  { %p3305_p5 = scmp.ne.s32.totalorder %s62_s18, %s3304_s4  ;;  %p3310_p7 = scmp.lt.s32.totalorder %s3304_s4, %s3304_s4 }
  0x2f   :  { %p3311_p8 = por %p3310_p7, %p3309_p6 }
  0x31   :  { %p3312_p9 = pnand %p3311_p8, %p3305_p5 }
  0x33   :  { %3315 = shalt.err (!%p3312_p9)
}
  0x34   :  { %67 = dma.hbm_to_vmem [thread:$0]  %s4019_s7, 512, %s62_s18, [#allocation9], %s3370_s20, %s3370_s20, %s3371_s21  }
  0x35   :  { %s3316_s26 = scalar_lea.hbm %s4021_s9, 512 }
  0x36   :  { %p3317_p10 = scmp.ne.s32.totalorder %s4021_s9, %s3316_s26  ;;  %p3320_p11 = scmp.lt.u32.totalorder %s3316_s26, %s4021_s9 }
  0x38   :  { %p3322_p12 = pnand %p3320_p11, %p3317_p10 }
  0x3a   :  { %3325 = shalt.err (!%p3322_p12)
}
  0x3b   :  { %s3326_s25 = scalar_lea.vmem %s3488_s22, 512  ;;  %p3331_p0 = scmp.lt.s32.totalorder %s3488_s22, %s3488_s22 }
  0x3c   :  { %p3327_p13 = scmp.ne.s32.totalorder %s3488_s22, %s3326_s25  ;;  %p3332_p1 = scmp.lt.s32.totalorder %s3326_s25, %s3326_s25 }
  0x3e   :  { %p3333_p2 = por %p3332_p1, %p3331_p0 }
  0x40   :  { %p3334_p3 = pnand %p3333_p2, %p3327_p13 }
  0x42   :  { %3337 = shalt.err (!%p3334_p3)
}
  0x43   :  { %81 = dma.hbm_to_vmem [thread:$0]  %s4021_s9, 512, %s3488_s22, [#allocation12], %s3370_s20, %s3370_s20, %s3371_s21  }
  0x44   :  { %3360 = dma.done.wait [#allocation6], 512  }
  0x45   :  { %3361 = vsyncadd [#allocation6], 4294966784 }
  0x46   :  { %3362 = dma.done.wait [#allocation9], 1024  }
  0x47   :  { %3363 = vsyncadd [#allocation9], 4294966272 }
  0x48   :  { %3364 = dma.done.wait [#allocation12], 512  }
  0x49   :  { %3365 = vsyncadd [#allocation12], 4294966784  ;;  %v100_v0 = vlaneseq  ;;  %vm128_vm2 = vcmask 130048   ;;  %v3374_v3 = vmov 0.5   ;;  %v107_v5 = vld [vmem:[%s4013_s1] sm:$0xff]  ;;  %v108_v6 = vld [vmem:[%s4013_s1 + $0x8] sm:$0xff] }
  0x4a   :  { %v118_v7 = vld [vmem:[%s4012_s0 + $0x20] sm:$0xff]  ;;  %v2999_v8 = vpack.c.bf16 %v108_v6, %v107_v5  ;;  %v110_v10 = vld [vmem:[%s4014_s2 + $0x8] sm:$0xff]  ;;  %v111_v14 = vld [vmem:[%s4014_s2 + $0x10] sm:$0xff]  ;;  %v3375_v21 = vmov 0.0|0.0   ;;  %vm3376_vm4 = vmmov 0   ;;  %v3377_v25 = vmov 0.0  }
  0x4b   :  { %v101_v1 = vand.u32 127, %v100_v0  ;;  %2729 = vmatprep.mubr.msk.f32.mxu1 %vm128_vm2, %v118_v7  ;;  %v109_v9 = vld [vmem:[%s4014_s2] sm:$0xff]  ;;  %v112_v15 = vld [vmem:[%s4014_s2 + $0x18] sm:$0xff]  ;;  %v119_v16 = vld [vmem:[%s4012_s0 + $0x28] sm:$0xff]  ;;  %s3379_s14 = smov 32   ;;  %vm279_vm5 = vcmask 261120  }
  0x4c   :  { %v114_v13 = vld [vmem:[%s4012_s0] sm:$0xff]  ;;  %3139 = vmatprep.subr.bf16.mxu1 %v2999_v8  ;;  %3000 = vmatprep.subr.bf16.mxu0 %v2999_v8  ;;  %v115_v18 = vld [vmem:[%s4012_s0 + $0x8] sm:$0xff]  ;;  %v120_v22 = vld [vmem:[%s4012_s0 + $0x30] sm:$0xff]  ;;  %vm2353_vm6 = vcmask 523264  }
  0x4d   :  { %vm102_vm0 = vcmp.ge.s32.totalorder %v101_v1, 64  ;;  %vm103_vm1 = vcmp.lt.s32.totalorder %v101_v1, 96  ;;  %3140 = vmatpush3.bf16.msra.mxu1 %v2999_v8  ;;  %3002 = vmatpush3.bf16.msra.mxu0 %v2999_v8  ;;  %v121_v23 = vld [vmem:[%s4012_s0 + $0x38] sm:$0xff]  ;;  %v3608_v28 = vld [vmem:[%s4015_s3] ss:$0 sm:$0xff]  ;;  %s3378_s3 = smov 64  }
  0x4e   :  { %vm3525_vm3 = vmand %vm102_vm0, %vm103_vm1  ;;  %3003 = vmatprep.subr.bf16.mxu1 %v3375_v21  ;;  %2723 = vmatprep.mubr.msk.f32.mxu0 %vm128_vm2, %v114_v13  ;;  %v116_v0 = vld [vmem:[%s4012_s0 + $0x10] sm:$0xff]  ;;  %v117_v1 = vld [vmem:[%s4012_s0 + $0x18] sm:$0xff] }
  0x4f   :  { %v3532_v4 = vsel %vm3525_vm3, 1.0, %v3374_v3  ;;  %3015 = vmatprep.subr.bf16.mxu0 %v3375_v21  ;;  %v3621_v39 = vsel %vm3525_vm3, 0.0, %v3374_v3 }
  0x50   :  { %v274_v11 = vmul.f32 %v109_v9, %v3532_v4  ;;  %v275_v12 = vmul.f32 %v110_v10, %v3532_v4  ;;  %v276_v19 = vmul.f32 %v111_v14, %v3532_v4  ;;  %v277_v20 = vmul.f32 %v112_v15, %v3532_v4  ;;  %2730 = vmatmul.mubr.msk.f32.vlgmr.msra.gmra.mrb[0].mxu1 %vm128_vm2, %v119_v16 }
  0x51   :  { %2724 = vmatmul.mubr.msk.f32.vlgmr.msra.gmra.mrb[0].mxu0 %vm128_vm2, %v115_v18  ;;  %2732 = vmatprep.mubr.msk.f32.mxu1 %vm128_vm2, %v120_v22 }
  0x52   :  { %v3564_v17 = vpack.c.bf16 %v275_v12, %v274_v11  ;;  %v3584_v24 = vpack.c.bf16 %v277_v20, %v276_v19  ;;  %2726 = vmatprep.mubr.msk.f32.mxu0 %vm128_vm2, %v116_v0 }
  0x54   :  { %3005 = vmatpush3.bf16.msra.mxu1 %v3564_v17  ;;  %3017 = vmatpush3.bf16.msra.mxu0 %v3564_v17 }
  0x55   :  { %3006 = vmatprep.subr.bf16.mxu1 %v3375_v21  ;;  %3018 = vmatprep.subr.bf16.mxu0 %v3375_v21 }
  0x56   :  { %2733 = vmatmul.mubr.msk.f32.gmra.mrb[2].mxu1 %vm128_vm2, %v121_v23  ;;  %2727 = vmatmul.mubr.msk.f32.gmra.mrb[2].mxu0 %vm128_vm2, %v117_v1 }
  0x57   :  { %2743 = vmatprep.mubr.msk.f32.mxu1 %vm3376_vm4, %v3377_v25  ;;  %2765 = vmatprep.mubr.msk.f32.mxu0 %vm3376_vm4, %v3377_v25 }
  0x58   :  { %3008 = vmatpush3.bf16.msra.mxu1 %v3584_v24  ;;  %3020 = vmatpush3.bf16.msra.mxu0 %v3584_v24 }
  0x59   :  { %3009 = vmatprep.subr.bf16.mxu1 %v3375_v21  ;;  %3027 = vmatprep.subr.bf16.mxu0 %v3375_v21 }
  0x5b   :  { %2744 = vmatmul.mubr.f32.vlgmr.msra.gmra.mrb[4].mxu1 %v3377_v25 }
  0x5c   :  { %3011 = vmatpush3.bf16.msra.mxu1 %v3564_v17  ;;  %2754 = vmatprep.mubr.msk.f32.mxu1 %vm3376_vm4, %v3377_v25 }
  0x5d   :  { %3012 = vmatprep.subr.bf16.mxu1 %v3375_v21 }
  0x60   :  { %3014 = vmatpush3.bf16.msra.mxu1 %v3584_v24 }
  0x61   :  { %3021 = vmatprep.subr.bf16.mxu1 %v3375_v21 }
 0x123   :  { %v3603_v26 = vpop.f32.mrb[0].mxu1 }
 0x124   :  { %v2725_v27 = vpop.f32.mrb[0].mxu0  ;;  %v3610_v29 = vpop.f32.mrb[1].mxu1 }
 0x125   :  { %v219_v30 = vpop.f32.mrb[1].mxu0  ;;  %v225_v51 = vadd.f32 %v2725_v27, %v3608_v28 }
 0x126   :  { %v220_v31 = vadd.f32 %v3608_v28, %v219_v30 }
 0x127   :  { %v259_v52 = vmul.f32 %v225_v51, %v3532_v4 }
 0x128   :  { %v258_v34 = vmul.f32 %v220_v31, %v3532_v4 }
 0x129   :  { %v3613_v32 = vpop.f32.mrb[2].mxu1  ;;  %v2728_v6 = vpop.f32.mrb[2].mxu0 }
 0x12a   :  { %v3615_v33 = vpop.f32.mrb[3].mxu1  ;;  %v229_v7 = vpop.f32.mrb[3].mxu0 }
 0x12b   :  { %v230_v9 = vadd.f32 %v3608_v28, %v229_v7 }
 0x12d   :  { %v260_v10 = vmul.f32 %v230_v9, %v3532_v4 }
 0x12e   :  { %v349_v35 = vpop.f32.mrb[4].mxu1 }
 0x12f   :  { %v353_v36 = vadd.f32 %v349_v35, %v258_v34  ;;  %v2745_v37 = vpop.f32.mrb[5].mxu1  ;;  %v235_v35 = vadd.f32 %v2728_v6, %v3608_v28  ;;  %v245_v6 = vadd.f32 %v3603_v26, %v3608_v28 }
 0x131   :  { %3154 = vtanh.f32 %v353_v36  ;;  %v261_v36 = vmul.f32 %v235_v35, %v3532_v4  ;;  %v263_v7 = vmul.f32 %v245_v6, %v3532_v4 }
 0x13b   :  { %v3155_v38 = vpop.eup %3154 }
 0x13c   :  { %v355_v40 = vmul.f32 %v3155_v38, %v3532_v4 }
 0x13e   :  { %v356_v41 = vadd.f32 %v355_v40, %v3621_v39 }
 0x140   :  { %359 = vrot.lane.b32.xlu0 %v356_v41, %s3378_s3  ;;  %v357_v44 = vmul.f32 0.0, %v356_v41 }
 0x1b2   :  { %v360_v42 = vpop.permute.xlu0 %359 }
 0x1b3   :  { %v362_v43 = vmul.f32 %v360_v42, %v356_v41 }
 0x1b5   :  { %364 = vrot.lane.b32.xlu0 %v362_v43, %s3379_s14 }
 0x227   :  { %v365_v45 = vpop.permute.xlu0 %364 }
 0x228   :  { %v367_v46 = vadd.f32 %v365_v45, %v357_v44 }
 0x22a   :  { %3156 = vtanh.f32 %v367_v46 }
 0x234   :  { %v3157_v47 = vpop.eup %3156 }
 0x235   :  { %370 = vrot.lane.b32.xlu1 %v3157_v47, %s3378_s3 }
 0x2a7   :  { %v371_v48 = vpop.permute.xlu1 %370 }
 0x2a8   :  { %v373_v49 = vmul.f32 %v371_v48, %v356_v41 }
 0x2aa   :  { %375 = vrot.lane.b32.xlu1 %v373_v49, %s3379_s14 }
 0x31c   :  { %v376_v50 = vpop.permute.xlu1 %375 }
 0x31d   :  { %378 = vst.msk [vmem:[#allocation2] sm:$0xff] %vm279_vm5, %v376_v50  ;;  %2755 = vmatmul.mubr.msk.f32.vlgmr.msra.gmra.mrb[6].mxu1 %vm279_vm5, %v376_v50 }
 0x31e   :  { %3023 = vmatpush3.bf16.msra.mxu1 %v3564_v17  ;;  %2776 = vmatprep.mubr.msk.f32.mxu1 %vm3376_vm4, %v3377_v25 }
 0x31f   :  { %3024 = vmatprep.subr.bf16.mxu1 %v3375_v21 }
 0x322   :  { %3026 = vmatpush3.bf16.msra.mxu1 %v3584_v24 }
 0x323   :  { %3033 = vmatprep.subr.bf16.mxu1 %v3375_v21 }
 0x324   :  { %v1081_v35 = vld [vmem:[#allocation2] sm:$0xff] }
 0x3f0   :  { %v448_v53 = vpop.f32.mrb[6].mxu1 }
 0x3f1   :  { %v452_v54 = vadd.f32 %v448_v53, %v259_v52  ;;  %v2756_v55 = vpop.f32.mrb[7].mxu1  ;;  %v240_v53 = vadd.f32 %v3608_v28, %v3610_v29 }
 0x3f3   :  { %3158 = vtanh.f32 %v452_v54  ;;  %v262_v54 = vmul.f32 %v240_v53, %v3532_v4 }
 0x3fd   :  { %v3159_v56 = vpop.eup %3158 }
 0x3fe   :  { %v454_v57 = vmul.f32 %v3159_v56, %v3532_v4 }
 0x400   :  { %v455_v58 = vadd.f32 %v454_v57, %v3621_v39 }
 0x402   :  { %458 = vrot.lane.b32.xlu0 %v455_v58, %s3378_s3  ;;  %v456_v61 = vmul.f32 %v455_v58, %v367_v46 }
 0x474   :  { %v459_v59 = vpop.permute.xlu0 %458 }
 0x475   :  { %v461_v60 = vmul.f32 %v459_v59, %v455_v58 }
 0x477   :  { %463 = vrot.lane.b32.xlu1 %v461_v60, %s3379_s14 }
 0x4e9   :  { %v464_v62 = vpop.permute.xlu1 %463 }
 0x4ea   :  { %v466_v63 = vadd.f32 %v464_v62, %v456_v61 }
 0x4ec   :  { %3160 = vtanh.f32 %v466_v63 }
 0x4f6   :  { %v3161_v2 = vpop.eup %3160 }
 0x4f7   :  { %469 = vrot.lane.b32.xlu0 %v3161_v2, %s3378_s3 }
 0x569   :  { %v470_v3 = vpop.permute.xlu0 %469 }
 0x56a   :  { %v472_v5 = vmul.f32 %v470_v3, %v455_v58 }
 0x56c   :  { %474 = vrot.lane.b32.xlu1 %v472_v5, %s3379_s14 }
 0x5de   :  { %v475_v8 = vpop.permute.xlu1 %474 }
 0x5df   :  { %477 = vst.msk [vmem:[#allocation2 + $0x8] sm:$0xff] %vm279_vm5, %v475_v8  ;;  %2766 = vmatmul.mubr.msk.f32.vlgmr.msra.gmra.mrb[4].mxu0 %vm279_vm5, %v475_v8 }
 0x5e0   :  { %3029 = vmatpush3.bf16.msra.mxu0 %v3564_v17  ;;  %2787 = vmatprep.mubr.msk.f32.mxu0 %vm3376_vm4, %v3377_v25 }
 0x5e1   :  { %3030 = vmatprep.subr.bf16.mxu0 %v3375_v21 }
 0x5e4   :  { %3032 = vmatpush3.bf16.msra.mxu0 %v3584_v24 }
 0x5e5   :  { %3039 = vmatprep.subr.bf16.mxu0 %v3375_v21 }
 0x6b2   :  { %v547_v11 = vpop.f32.mrb[4].mxu0 }
 0x6b3   :  { %v551_v12 = vadd.f32 %v547_v11, %v260_v10  ;;  %v2767_v13 = vpop.f32.mrb[5].mxu0 }
 0x6b5   :  { %3162 = vtanh.f32 %v551_v12 }
 0x6bf   :  { %v3163_v14 = vpop.eup %3162 }
 0x6c0   :  { %v553_v15 = vmul.f32 %v3163_v14, %v3532_v4 }
 0x6c2   :  { %v554_v16 = vadd.f32 %v553_v15, %v3621_v39 }
 0x6c4   :  { %557 = vrot.lane.b32.xlu0 %v554_v16, %s3378_s3  ;;  %v555_v20 = vmul.f32 %v554_v16, %v466_v63 }
 0x736   :  { %v558_v18 = vpop.permute.xlu0 %557 }
 0x737   :  { %v560_v19 = vmul.f32 %v558_v18, %v554_v16  ;;  %v1073_v18 = vld [vmem:[#allocation5 + $0x8] sm:$0xff] }
 0x739   :  { %562 = vrot.lane.b32.xlu1 %v560_v19, %s3379_s14 }
 0x7ab   :  { %v563_v22 = vpop.permute.xlu1 %562 }
 0x7ac   :  { %v565_v23 = vadd.f32 %v563_v22, %v555_v20 }
 0x7ae   :  { %3164 = vtanh.f32 %v565_v23 }
 0x7b8   :  { %v3165_v27 = vpop.eup %3164 }
 0x7b9   :  { %568 = vrot.lane.b32.xlu0 %v3165_v27, %s3378_s3  ;;  %v1074_v27 = vld [vmem:[#allocation5 + $0x10] sm:$0xff] }
 0x82b   :  { %v569_v30 = vpop.permute.xlu0 %568 }
 0x82c   :  { %v571_v31 = vmul.f32 %v569_v30, %v554_v16  ;;  %v1072_v16 = vld [vmem:[#allocation5] sm:$0xff]  ;;  %v1075_v30 = vld [vmem:[#allocation5 + $0x18] sm:$0xff] }
 0x82d   :  { %v3051_v19 = vpack.c.bf16 %v1073_v18, %v1072_v16 }
 0x82e   :  { %573 = vrot.lane.b32.xlu1 %v571_v31, %s3379_s14  ;;  %v3055_v31 = vpack.c.bf16 %v1075_v30, %v1074_v27 }
 0x8a0   :  { %v574_v34 = vpop.permute.xlu1 %573 }
 0x8a1   :  { %576 = vst.msk [vmem:[#allocation2 + $0x10] sm:$0xff] %vm279_vm5, %v574_v34  ;;  %2777 = vmatmul.mubr.msk.f32.vlgmr.msra.gmra.mrb[8].mxu1 %vm279_vm5, %v574_v34 }
 0x8a2   :  { %3035 = vmatpush3.bf16.msra.mxu1 %v3564_v17  ;;  %2798 = vmatprep.mubr.msk.f32.mxu1 %vm3376_vm4, %v3377_v25 }
 0x8a3   :  { %3036 = vmatprep.subr.bf16.mxu1 %v3375_v21 }
 0x8a6   :  { %3038 = vmatpush3.bf16.msra.mxu1 %v3584_v24 }
 0x8a7   :  { %3045 = vmatprep.subr.bf16.mxu1 %v3375_v21 }
 0x974   :  { %v646_v37 = vpop.f32.mrb[8].mxu1 }
 0x975   :  { %v650_v38 = vadd.f32 %v646_v37, %v261_v36  ;;  %v2778_v40 = vpop.f32.mrb[9].mxu1  ;;  %v1082_v36 = vld [vmem:[#allocation2 + $0x8] sm:$0xff]  ;;  %v1083_v37 = vld [vmem:[#allocation2 + $0x10] sm:$0xff] }
 0x977   :  { %3166 = vtanh.f32 %v650_v38 }
 0x981   :  { %v3167_v41 = vpop.eup %3166 }
 0x982   :  { %v652_v42 = vmul.f32 %v3167_v41, %v3532_v4 }
 0x984   :  { %v653_v43 = vadd.f32 %v652_v42, %v3621_v39  ;;  %v250_v42 = vadd.f32 %v3608_v28, %v3615_v33 }
 0x986   :  { %656 = vrot.lane.b32.xlu0 %v653_v43, %s3378_s3  ;;  %v654_v46 = vmul.f32 %v653_v43, %v565_v23 }
 0x9f8   :  { %v657_v44 = vpop.permute.xlu0 %656 }
 0x9f9   :  { %v659_v45 = vmul.f32 %v657_v44, %v653_v43 }
 0x9fb   :  { %661 = vrot.lane.b32.xlu1 %v659_v45, %s3379_s14 }
 0xa6d   :  { %v662_v47 = vpop.permute.xlu1 %661 }
 0xa6e   :  { %v664_v48 = vadd.f32 %v662_v47, %v654_v46 }
 0xa70   :  { %3168 = vtanh.f32 %v664_v48 }
 0xa7a   :  { %v3169_v49 = vpop.eup %3168 }
 0xa7b   :  { %667 = vrot.lane.b32.xlu0 %v3169_v49, %s3378_s3 }
 0xaed   :  { %v668_v50 = vpop.permute.xlu0 %667 }
 0xaee   :  { %v670_v51 = vmul.f32 %v668_v50, %v653_v43  ;;  %v264_v43 = vmul.f32 %v250_v42, %v3532_v4 }
 0xaf0   :  { %672 = vrot.lane.b32.xlu1 %v670_v51, %s3379_s14 }
 0xb62   :  { %v673_v52 = vpop.permute.xlu1 %672 }
 0xb63   :  { %675 = vst.msk [vmem:[#allocation2 + $0x18] sm:$0xff] %vm279_vm5, %v673_v52  ;;  %2788 = vmatmul.mubr.msk.f32.vlgmr.msra.gmra.mrb[6].mxu0 %vm279_vm5, %v673_v52 }
 0xb64   :  { %3041 = vmatpush3.bf16.msra.mxu0 %v3564_v17  ;;  %2809 = vmatprep.mubr.msk.f32.mxu0 %vm3376_vm4, %v3377_v25 }
 0xb65   :  { %3042 = vmatprep.subr.bf16.mxu0 %v3375_v21 }
 0xb68   :  { %3044 = vmatpush3.bf16.msra.mxu0 %v3584_v24 }
 0xb69   :  { %3052 = vmatprep.subr.bf16.mxu0 %v3051_v19 }
 0xb6a   :  { %v1084_v38 = vld [vmem:[#allocation2 + $0x18] sm:$0xff] }
 0xc36   :  { %v745_v55 = vpop.f32.mrb[6].mxu0 }
 0xc37   :  { %v749_v56 = vadd.f32 %v745_v55, %v262_v54  ;;  %v2789_v57 = vpop.f32.mrb[7].mxu0 }
 0xc39   :  { %3170 = vtanh.f32 %v749_v56 }
 0xc43   :  { %v3171_v58 = vpop.eup %3170 }
 0xc44   :  { %v751_v59 = vmul.f32 %v3171_v58, %v3532_v4 }
 0xc46   :  { %v752_v60 = vadd.f32 %v751_v59, %v3621_v39 }
 0xc48   :  { %755 = vrot.lane.b32.xlu0 %v752_v60, %s3378_s3  ;;  %v753_v63 = vmul.f32 %v752_v60, %v664_v48 }
 0xcba   :  { %v756_v61 = vpop.permute.xlu0 %755 }
 0xcbb   :  { %v758_v62 = vmul.f32 %v756_v61, %v752_v60  ;;  %v1076_v61 = vld [vmem:[#allocation8] sm:$0xff] }
 0xcbd   :  { %760 = vrot.lane.b32.xlu1 %v758_v62, %s3379_s14  ;;  %v1077_v62 = vld [vmem:[#allocation8 + $0x8] sm:$0xff] }
 0xd2f   :  { %v761_v0 = vpop.permute.xlu1 %760 }
 0xd30   :  { %v763_v29 = vadd.f32 %v761_v0, %v753_v63  ;;  %v1240_v63 = vmul.f32 %v1076_v61, %v3532_v4  ;;  %v1241_v0 = vmul.f32 %v1077_v62, %v3532_v4 }
 0xd32   :  { %3172 = vtanh.f32 %v763_v29 }
 0xd3c   :  { %v3173_v1 = vpop.eup %3172 }
 0xd3d   :  { %766 = vrot.lane.b32.xlu0 %v3173_v1, %s3378_s3  ;;  %v1078_v1 = vld [vmem:[#allocation8 + $0x10] sm:$0xff] }
 0xdaf   :  { %v767_v2 = vpop.permute.xlu0 %766 }
 0xdb0   :  { %v769_v3 = vmul.f32 %v767_v2, %v752_v60  ;;  %v1079_v2 = vld [vmem:[#allocation8 + $0x18] sm:$0xff] }
 0xdb2   :  { %771 = vrot.lane.b32.xlu1 %v769_v3, %s3379_s14  ;;  %v1242_v3 = vmul.f32 %v1078_v1, %v3532_v4 }
 0xe24   :  { %v772_v5 = vpop.permute.xlu1 %771 }
 0xe25   :  { %774 = vst.msk [vmem:[#allocation2 + $0x20] sm:$0xff] %vm279_vm5, %v772_v5  ;;  %2799 = vmatmul.mubr.msk.f32.vlgmr.msra.gmra.mrb[10].mxu1 %vm279_vm5, %v772_v5  ;;  %v1243_v5 = vmul.f32 %v1079_v2, %v3532_v4 }
 0xe26   :  { %3047 = vmatpush3.bf16.msra.mxu1 %v3564_v17  ;;  %2820 = vmatprep.mubr.msk.f32.mxu1 %vm3376_vm4, %v3377_v25 }
 0xe27   :  { %3048 = vmatprep.subr.bf16.mxu1 %v3375_v21  ;;  %v3758_v6 = vpack.c.bf16 %v1243_v5, %v1242_v3 }
 0xe2a   :  { %3050 = vmatpush3.bf16.msra.mxu1 %v3584_v24 }
 0xe2b   :  { %3059 = vmatprep.subr.bf16.mxu1 %v3375_v21 }
 0xe2c   :  { %v1085_v40 = vld [vmem:[#allocation2 + $0x20] sm:$0xff] }
 0xef8   :  { %v844_v8 = vpop.f32.mrb[10].mxu1 }
 0xef9   :  { %v848_v9 = vadd.f32 %v844_v8, %v263_v7  ;;  %v2800_v10 = vpop.f32.mrb[11].mxu1 }
 0xefb   :  { %3174 = vtanh.f32 %v848_v9 }
 0xf05   :  { %v3175_v11 = vpop.eup %3174 }
 0xf06   :  { %v850_v17 = vmul.f32 %v3175_v11, %v3532_v4  ;;  %v255_v11 = vadd.f32 %v3613_v32, %v3608_v28 }
 0xf08   :  { %v851_v12 = vadd.f32 %v850_v17, %v3621_v39  ;;  %v265_v17 = vmul.f32 %v255_v11, %v3532_v4 }
 0xf0a   :  { %854 = vrot.lane.b32.xlu0 %v851_v12, %s3378_s3  ;;  %v852_v14 = vmul.f32 %v851_v12, %v763_v29  ;;  %v3752_v29 = vpack.c.bf16 %v1241_v0, %v1240_v63 }
 0xf7c   :  { %v855_v13 = vpop.permute.xlu0 %854 }
 0xf7d   :  { %v857_v24 = vmul.f32 %v855_v13, %v851_v12 }
 0xf7f   :  { %859 = vrot.lane.b32.xlu1 %v857_v24, %s3379_s14 }
 0xff1   :  { %v860_v15 = vpop.permute.xlu1 %859 }
 0xff2   :  { %v862_v26 = vadd.f32 %v860_v15, %v852_v14 }
 0xff4   :  { %3176 = vtanh.f32 %v862_v26 }
 0xffe   :  { %v3177_v20 = vpop.eup %3176 }
 0xfff   :  { %865 = vrot.lane.b32.xlu0 %v3177_v20, %s3378_s3 }
0x1071   :  { %v866_v22 = vpop.permute.xlu0 %865 }
0x1072   :  { %v868_v23 = vmul.f32 %v866_v22, %v851_v12  ;;  %v3785_v12 = vld [vmem:[%s4018_s6] ss:$0 sm:$0xff] }
0x1074   :  { %870 = vrot.lane.b32.xlu1 %v868_v23, %s3379_s14 }
0x10e6   :  { %v871_v34 = vpop.permute.xlu1 %870 }
0x10e7   :  { %873 = vst.msk [vmem:[#allocation2 + $0x28] sm:$0xff] %vm279_vm5, %v871_v34  ;;  %2810 = vmatmul.mubr.msk.f32.vlgmr.msra.gmra.mrb[8].mxu0 %vm279_vm5, %v871_v34 }
0x10e8   :  { %3054 = vmatpush3.bf16.msra.mxu0 %v3051_v19  ;;  %2831 = vmatprep.mubr.msk.f32.mxu0 %vm279_vm5, %v1081_v35 }
0x10e9   :  { %3056 = vmatprep.subr.bf16.mxu0 %v3055_v31 }
0x10ec   :  { %3058 = vmatpush3.bf16.msra.mxu0 %v3055_v31 }
0x10ed   :  { %3071 = vmatprep.subr.bf16.mxu0 %v3375_v21 }
0x10ee   :  { %v1086_v41 = vld [vmem:[#allocation2 + $0x28] sm:$0xff] }
0x10ef   :  { %2832 = vmatmul.mubr.msk.f32.vlgmr.msra.gmra.mrb[10].mxu0 %vm279_vm5, %v1082_v36 }
0x10f0   :  { %2834 = vmatprep.mubr.msk.f32.mxu0 %vm279_vm5, %v1083_v37  ;;  %3073 = vmatpush3.bf16.msra.mxu0 %v3752_v29 }
0x10f1   :  { %3074 = vmatprep.subr.bf16.mxu0 %v3375_v21 }
0x10f3   :  { %2835 = vmatmul.mubr.msk.f32.gmra.mrb[12].mxu0 %vm279_vm5, %v1084_v38 }
0x10f4   :  { %2837 = vmatprep.mubr.msk.f32.mxu0 %vm279_vm5, %v1085_v40  ;;  %3076 = vmatpush3.bf16.msra.mxu0 %v3758_v6 }
0x10f5   :  { %3083 = vmatprep.subr.bf16.mxu0 %v3375_v21 }
0x10f7   :  { %2838 = vmatmul.mubr.msk.f32.gmra.mrb[14].mxu0 %vm279_vm5, %v1086_v41 }
0x11ba   :  { %v943_v44 = vpop.f32.mrb[8].mxu0 }
0x11bb   :  { %v947_v45 = vadd.f32 %v943_v44, %v264_v43  ;;  %v2811_v46 = vpop.f32.mrb[9].mxu0 }
0x11bd   :  { %3178 = vtanh.f32 %v947_v45 }
0x11c2   :  { %v3732_v47 = vpop.f32.mrb[10].mxu0 }
0x11c3   :  { %v1185_v48 = vpop.f32.mrb[11].mxu0 }
0x11c4   :  { %v1186_v15 = vadd.f32 %v3785_v12, %v1185_v48 }
0x11c6   :  { %v3734_v49 = vpop.f32.mrb[12].mxu0 }
0x11c7   :  { %v3179_v50 = vpop.eup %3178  ;;  %v3736_v51 = vpop.f32.mrb[13].mxu0 }
0x11c8   :  { %v949_v52 = vmul.f32 %v3179_v50, %v3532_v4 }
0x11ca   :  { %v3739_v53 = vpop.f32.mrb[14].mxu0  ;;  %v950_v33 = vadd.f32 %v949_v52, %v3621_v39 }
0x11cb   :  { %v3742_v54 = vpop.f32.mrb[15].mxu0 }
0x11cc   :  { %953 = vrot.lane.b32.xlu0 %v950_v33, %s3378_s3  ;;  %v951_v57 = vmul.f32 %v950_v33, %v862_v26  ;;  %v1224_v26 = vmul.f32 %v1186_v15, %v3532_v4 }
0x123e   :  { %v954_v55 = vpop.permute.xlu0 %953 }
0x123f   :  { %v956_v56 = vmul.f32 %v954_v55, %v950_v33 }
0x1241   :  { %958 = vrot.lane.b32.xlu1 %v956_v56, %s3379_s14 }
0x12b3   :  { %v959_v58 = vpop.permute.xlu1 %958 }
0x12b4   :  { %v3746_v59 = vadd.f32 %v959_v58, %v951_v57 }
0x12b6   :  { %3180 = vtanh.f32 %v3746_v59 }
0x12c0   :  { %v3181_v60 = vpop.eup %3180 }
0x12c1   :  { %964 = vrot.lane.b32.xlu0 %v3181_v60, %s3378_s3 }
0x1333   :  { %v965_v7 = vpop.permute.xlu0 %964 }
0x1334   :  { %v967_v8 = vmul.f32 %v965_v7, %v950_v33  ;;  %v1191_v33 = vadd.f32 %v3732_v47, %v3785_v12 }
0x1336   :  { %969 = vrot.lane.b32.xlu1 %v967_v8, %s3379_s14  ;;  %v1225_v55 = vmul.f32 %v1191_v33, %v3532_v4  ;;  %v1206_v33 = vadd.f32 %v3785_v12, %v3742_v54 }
0x13a8   :  { %v970_v9 = vpop.permute.xlu1 %969 }
0x13a9   :  { %972 = vst.msk [vmem:[#allocation2 + $0x30] sm:$0xff] %vm279_vm5, %v970_v9  ;;  %2821 = vmatmul.mubr.msk.f32.vlgmr.msra.gmra.mrb[12].mxu1 %vm279_vm5, %v970_v9 }
0x13aa   :  { %3061 = vmatpush3.bf16.msra.mxu1 %v3752_v29  ;;  %2851 = vmatprep.mubr.msk.f32.mxu1 %vm3376_vm4, %v3377_v25 }
0x13ab   :  { %3062 = vmatprep.subr.bf16.mxu1 %v3375_v21 }
0x13ae   :  { %3064 = vmatpush3.bf16.msra.mxu1 %v3758_v6 }
0x13af   :  { %3065 = vmatprep.subr.bf16.mxu1 %v3375_v21 }
0x13b0   :  { %v1087_v10 = vld [vmem:[#allocation2 + $0x30] sm:$0xff] }
0x13b1   :  { %2852 = vmatmul.mubr.f32.vlgmr.msra.gmra.mrb[14].mxu1 %v3377_v25  ;;  %2840 = vmatprep.mubr.msk.f32.mxu0 %vm279_vm5, %v1087_v10 }
0x13b2   :  { %3067 = vmatpush3.bf16.msra.mxu1 %v3752_v29  ;;  %2862 = vmatprep.mubr.msk.f32.mxu1 %vm3376_vm4, %v3377_v25 }
0x13b3   :  { %3068 = vmatprep.subr.bf16.mxu1 %v3375_v21 }
0x13b6   :  { %3070 = vmatpush3.bf16.msra.mxu1 %v3758_v6 }
0x13b7   :  { %3077 = vmatprep.subr.bf16.mxu1 %v3375_v21 }
0x147c   :  { %v1042_v13 = vpop.f32.mrb[12].mxu1 }
0x147d   :  { %v1046_v24 = vadd.f32 %v1042_v13, %v265_v17  ;;  %v2822_v14 = vpop.f32.mrb[13].mxu1  ;;  %v1196_v17 = vadd.f32 %v3785_v12, %v3736_v51 }
0x147f   :  { %v1226_v13 = vmul.f32 %v1196_v17, %v3532_v4 }
0x1484   :  { %v1311_v16 = vpop.f32.mrb[14].mxu1 }
0x1485   :  { %v1315_v18 = vadd.f32 %v1311_v16, %v1224_v26  ;;  %v2853_v19 = vpop.f32.mrb[15].mxu1 }
0x1487   :  { %3182 = vtanh.f32 %v1315_v18 }
0x1488   :  { %3184 = vtanh.f32 %v1046_v24 }
0x1491   :  { %v3183_v20 = vpop.eup %3182 }
0x1492   :  { %v1317_v28 = vmul.f32 %v3183_v20, %v3532_v4  ;;  %v3185_v34 = vpop.eup %3184 }
0x1493   :  { %v1048_v35 = vmul.f32 %v3185_v34, %v3532_v4 }
0x1494   :  { %v1318_v32 = vadd.f32 %v1317_v28, %v3621_v39 }
0x1495   :  { %v1049_v37 = vadd.f32 %v1048_v35, %v3621_v39 }
0x1496   :  { %1321 = vrot.lane.b32.xlu0 %v1318_v32, %s3378_s3  ;;  %v1319_v27 = vmul.f32 0.0, %v1318_v32 }
0x1497   :  { %v1050_v44 = vmul.f32 %v1049_v37, %v3746_v59 }
0x1508   :  { %v1322_v22 = vpop.permute.xlu0 %1321 }
0x1509   :  { %v1324_v23 = vmul.f32 %v1322_v22, %v1318_v32 }
0x150b   :  { %1326 = vrot.lane.b32.xlu1 %v1324_v23, %s3379_s14 }
0x157d   :  { %v1327_v30 = vpop.permute.xlu1 %1326 }
0x157e   :  { %v1329_v31 = vadd.f32 %v1327_v30, %v1319_v27 }
0x1580   :  { %3186 = vtanh.f32 %v1329_v31 }
0x158a   :  { %v3187_v36 = vpop.eup %3186 }
0x158b   :  { %1332 = vrot.lane.b32.xlu0 %v3187_v36, %s3378_s3 }
0x158f   :  { %1052 = vrot.lane.b32.xlu0 %v1049_v37, %s3378_s3 }
0x15fd   :  { %v1333_v38 = vpop.permute.xlu0 %1332 }
0x15fe   :  { %v1335_v40 = vmul.f32 %v1333_v38, %v1318_v32 }
0x1600   :  { %1337 = vrot.lane.b32.xlu1 %v1335_v40, %s3379_s14 }
0x1601   :  { %v1053_v41 = vpop.permute.xlu0 %1052 }
0x1602   :  { %v1055_v42 = vmul.f32 %v1053_v41, %v1049_v37 }
0x1604   :  { %1057 = vrot.lane.b32.xlu0 %v1055_v42, %s3379_s14 }
0x1672   :  { %v1338_v43 = vpop.permute.xlu1 %1337 }
0x1673   :  { %1340 = vst.msk [vmem:[#allocation3] sm:$0xff] %vm279_vm5, %v1338_v43  ;;  %2863 = vmatmul.mubr.msk.f32.vlgmr.msra.gmra.mrb[16].mxu1 %vm279_vm5, %v1338_v43 }
0x1674   :  { %3079 = vmatpush3.bf16.msra.mxu1 %v3752_v29  ;;  %2884 = vmatprep.mubr.msk.f32.mxu1 %vm3376_vm4, %v3377_v25 }
0x1675   :  { %3080 = vmatprep.subr.bf16.mxu1 %v3375_v21 }
0x1676   :  { %v1058_v45 = vpop.permute.xlu0 %1057 }
0x1677   :  { %v1060_v46 = vadd.f32 %v1058_v45, %v1050_v44 }
0x1678   :  { %3082 = vmatpush3.bf16.msra.mxu1 %v3758_v6 }
0x1679   :  { %3188 = vtanh.f32 %v1060_v46  ;;  %3089 = vmatprep.subr.bf16.mxu1 %v3375_v21 }
0x1683   :  { %v3189_v48 = vpop.eup %3188 }
0x1684   :  { %1063 = vrot.lane.b32.xlu0 %v3189_v48, %s3378_s3 }
0x16f6   :  { %v1064_v50 = vpop.permute.xlu0 %1063 }
0x16f7   :  { %v1066_v52 = vmul.f32 %v1064_v50, %v1049_v37 }
0x16f9   :  { %1068 = vrot.lane.b32.xlu0 %v1066_v52, %s3379_s14 }
0x1746   :  { %v1410_v56 = vpop.f32.mrb[16].mxu1 }
0x1747   :  { %v1414_v57 = vadd.f32 %v1410_v56, %v1225_v55  ;;  %v2864_v58 = vpop.f32.mrb[17].mxu1  ;;  %v1228_v55 = vmul.f32 %v1206_v33, %v3532_v4 }
0x1749   :  { %3190 = vtanh.f32 %v1414_v57 }
0x1753   :  { %v3191_v59 = vpop.eup %3190 }
0x1754   :  { %v1416_v60 = vmul.f32 %v3191_v59, %v3532_v4 }
0x1756   :  { %v1417_v61 = vadd.f32 %v1416_v60, %v3621_v39 }
0x1758   :  { %1420 = vrot.lane.b32.xlu1 %v1417_v61, %s3378_s3  ;;  %v1418_v1 = vmul.f32 %v1417_v61, %v1329_v31  ;;  %v1201_v31 = vadd.f32 %v3734_v49, %v3785_v12 }
0x175a   :  { %v1227_v34 = vmul.f32 %v1201_v31, %v3532_v4 }
0x176b   :  { %v1069_v62 = vpop.permute.xlu0 %1068 }
0x176c   :  { %1071 = vst.msk [vmem:[#allocation2 + $0x38] sm:$0xff] %vm279_vm5, %v1069_v62 }
0x1773   :  { %v1088_v63 = vld [vmem:[#allocation2 + $0x38] sm:$0xff] }
0x1774   :  { %2841 = vmatmul.mubr.msk.f32.gmra.mrb[16].mxu0 %vm279_vm5, %v1088_v63 }
0x1775   :  { %2873 = vmatprep.mubr.msk.f32.mxu0 %vm3376_vm4, %v3377_v25 }
0x17ca   :  { %v1421_v47 = vpop.permute.xlu1 %1420 }
0x17cb   :  { %v1423_v0 = vmul.f32 %v1421_v47, %v1417_v61 }
0x17cd   :  { %1425 = vrot.lane.b32.xlu1 %v1423_v0, %s3379_s14 }
0x183f   :  { %v1426_v2 = vpop.permute.xlu1 %1425 }
0x1840   :  { %v1428_v3 = vadd.f32 %v1426_v2, %v1418_v1 }
0x1842   :  { %3192 = vtanh.f32 %v1428_v3 }
0x1847   :  { %v3821_v5 = vpop.f32.mrb[16].mxu0 }
0x1848   :  { %v3823_v7 = vpop.f32.mrb[17].mxu0 }
0x184c   :  { %v3193_v8 = vpop.eup %3192 }
0x184d   :  { %1431 = vrot.lane.b32.xlu1 %v3193_v8, %s3378_s3 }
0x18bf   :  { %v1432_v9 = vpop.permute.xlu1 %1431 }
0x18c0   :  { %v1434_v10 = vmul.f32 %v1432_v9, %v1417_v61  ;;  %v1211_v9 = vadd.f32 %v3739_v53, %v3785_v12 }
0x18c2   :  { %1436 = vrot.lane.b32.xlu1 %v1434_v10, %s3379_s14  ;;  %v1229_v10 = vmul.f32 %v1211_v9, %v3532_v4 }
0x1934   :  { %v1437_v11 = vpop.permute.xlu1 %1436 }
0x1935   :  { %1439 = vst.msk [vmem:[#allocation3 + $0x8] sm:$0xff] %vm279_vm5, %v1437_v11  ;;  %2874 = vmatmul.mubr.msk.f32.vlgmr.msra.gmra.mrb[18].mxu0 %vm279_vm5, %v1437_v11 }
0x1936   :  { %3085 = vmatpush3.bf16.msra.mxu0 %v3752_v29  ;;  %2895 = vmatprep.mubr.msk.f32.mxu0 %vm3376_vm4, %v3377_v25 }
0x1937   :  { %3086 = vmatprep.subr.bf16.mxu0 %v3375_v21 }
0x193a   :  { %3088 = vmatpush3.bf16.msra.mxu0 %v3758_v6 }
0x193b   :  { %3095 = vmatprep.subr.bf16.mxu0 %v3375_v21 }
0x1a08   :  { %v1509_v24 = vpop.f32.mrb[18].mxu0 }
0x1a09   :  { %v1513_v14 = vadd.f32 %v1509_v24, %v1226_v13  ;;  %v2875_v15 = vpop.f32.mrb[19].mxu0 }
0x1a0b   :  { %3194 = vtanh.f32 %v1513_v14 }
0x1a15   :  { %v3195_v26 = vpop.eup %3194 }
0x1a16   :  { %v1515_v16 = vmul.f32 %v3195_v26, %v3532_v4  ;;  %v2042_v26 = vld [vmem:[#allocation10] sm:$0xff] }
0x1a18   :  { %v1516_v18 = vadd.f32 %v1515_v16, %v3621_v39  ;;  %v2043_v16 = vld [vmem:[#allocation10 + $0x8] sm:$0xff] }
0x1a1a   :  { %1519 = vrot.lane.b32.xlu0 %v1516_v18, %s3378_s3  ;;  %v1517_v28 = vmul.f32 %v1516_v18, %v1428_v3 }
0x1a8c   :  { %v1520_v19 = vpop.permute.xlu0 %1519 }
0x1a8d   :  { %v1522_v20 = vmul.f32 %v1520_v19, %v1516_v18 }
0x1a8f   :  { %1524 = vrot.lane.b32.xlu1 %v1522_v20, %s3379_s14 }
0x1b01   :  { %v1525_v32 = vpop.permute.xlu1 %1524 }
0x1b02   :  { %v1527_v51 = vadd.f32 %v1525_v32, %v1517_v28  ;;  %v2044_v32 = vld [vmem:[#allocation10 + $0x10] sm:$0xff] }
0x1b04   :  { %3196 = vtanh.f32 %v1527_v51 }
0x1b0e   :  { %v3197_v22 = vpop.eup %3196 }
0x1b0f   :  { %1530 = vrot.lane.b32.xlu0 %v3197_v22, %s3378_s3 }
0x1b81   :  { %v1531_v23 = vpop.permute.xlu0 %1530 }
0x1b82   :  { %v1533_v27 = vmul.f32 %v1531_v23, %v1516_v18  ;;  %v3107_v18 = vpack.c.bf16 %v2043_v16, %v2042_v26 }
0x1b84   :  { %1535 = vrot.lane.b32.xlu1 %v1533_v27, %s3379_s14  ;;  %v2034_v27 = vld [vmem:[#allocation3] sm:$0xff] }
0x1bf6   :  { %v1536_v30 = vpop.permute.xlu1 %1535 }
0x1bf7   :  { %1538 = vst.msk [vmem:[#allocation3 + $0x10] sm:$0xff] %vm279_vm5, %v1536_v30  ;;  %2885 = vmatmul.mubr.msk.f32.vlgmr.msra.gmra.mrb[18].mxu1 %vm279_vm5, %v1536_v30  ;;  %v2035_v30 = vld [vmem:[#allocation3 + $0x8] sm:$0xff] }
0x1bf8   :  { %3091 = vmatpush3.bf16.msra.mxu1 %v3752_v29  ;;  %2906 = vmatprep.mubr.msk.f32.mxu1 %vm3376_vm4, %v3377_v25 }
0x1bf9   :  { %3092 = vmatprep.subr.bf16.mxu1 %v3375_v21 }
0x1bfc   :  { %3094 = vmatpush3.bf16.msra.mxu1 %v3758_v6 }
0x1bfd   :  { %3101 = vmatprep.subr.bf16.mxu1 %v3375_v21 }
0x1bfe   :  { %v2036_v31 = vld [vmem:[#allocation3 + $0x10] sm:$0xff] }
0x1cca   :  { %v1608_v35 = vpop.f32.mrb[18].mxu1 }
0x1ccb   :  { %v1612_v36 = vadd.f32 %v1608_v35, %v1227_v34  ;;  %v2886_v37 = vpop.f32.mrb[19].mxu1 }
0x1ccc   :  { %v1216_v37 = vadd.f32 %v3785_v12, %v3823_v7 }
0x1ccd   :  { %3198 = vtanh.f32 %v1612_v36 }
0x1cd7   :  { %v3199_v38 = vpop.eup %3198 }
0x1cd8   :  { %v1614_v40 = vmul.f32 %v3199_v38, %v3532_v4  ;;  %v1230_v38 = vmul.f32 %v1216_v37, %v3532_v4  ;;  %v2338_v37 = vld [vmem:[%s4023_s11] sm:$0xff] }
0x1cda   :  { %v1615_v41 = vadd.f32 %v1614_v40, %v3621_v39 }
0x1cdc   :  { %1618 = vrot.lane.b32.xlu0 %v1615_v41, %s3378_s3  ;;  %v1616_v44 = vmul.f32 %v1615_v41, %v1527_v51  ;;  %v2045_v51 = vld [vmem:[#allocation10 + $0x18] sm:$0xff] }
0x1cdd   :  { %v3111_v22 = vpack.c.bf16 %v2045_v51, %v2044_v32 }
0x1d4e   :  { %v1619_v42 = vpop.permute.xlu0 %1618 }
0x1d4f   :  { %v1621_v43 = vmul.f32 %v1619_v42, %v1615_v41 }
0x1d51   :  { %1623 = vrot.lane.b32.xlu1 %v1621_v43, %s3379_s14 }
0x1dc3   :  { %v1624_v45 = vpop.permute.xlu1 %1623 }
0x1dc4   :  { %v1626_v49 = vadd.f32 %v1624_v45, %v1616_v44 }
0x1dc6   :  { %3200 = vtanh.f32 %v1626_v49 }
0x1dd0   :  { %v3201_v46 = vpop.eup %3200 }
0x1dd1   :  { %1629 = vrot.lane.b32.xlu0 %v3201_v46, %s3378_s3 }
0x1e43   :  { %v1630_v48 = vpop.permute.xlu0 %1629 }
0x1e44   :  { %v1632_v50 = vmul.f32 %v1630_v48, %v1615_v41 }
0x1e46   :  { %1634 = vrot.lane.b32.xlu1 %v1632_v50, %s3379_s14 }
0x1eb8   :  { %v1635_v52 = vpop.permute.xlu1 %1634 }
0x1eb9   :  { %1637 = vst.msk [vmem:[#allocation3 + $0x18] sm:$0xff] %vm279_vm5, %v1635_v52  ;;  %2896 = vmatmul.mubr.msk.f32.vlgmr.msra.gmra.mrb[20].mxu0 %vm279_vm5, %v1635_v52 }
0x1eba   :  { %3097 = vmatpush3.bf16.msra.mxu0 %v3752_v29  ;;  %2917 = vmatprep.mubr.msk.f32.mxu0 %vm3376_vm4, %v3377_v25 }
0x1ebb   :  { %3098 = vmatprep.subr.bf16.mxu0 %v3375_v21 }
0x1ebe   :  { %3100 = vmatpush3.bf16.msra.mxu0 %v3758_v6 }
0x1ebf   :  { %3108 = vmatprep.subr.bf16.mxu0 %v3107_v18 }
0x1ec0   :  { %v2037_v34 = vld [vmem:[#allocation3 + $0x18] sm:$0xff] }
0x1f8c   :  { %v1707_v56 = vpop.f32.mrb[20].mxu0 }
0x1f8d   :  { %v1711_v57 = vadd.f32 %v1707_v56, %v1228_v55  ;;  %v2897_v58 = vpop.f32.mrb[21].mxu0 }
0x1f8f   :  { %3202 = vtanh.f32 %v1711_v57 }
0x1f99   :  { %v3203_v59 = vpop.eup %3202 }
0x1f9a   :  { %v1713_v60 = vmul.f32 %v3203_v59, %v3532_v4  ;;  %v2190_v59 = vld [vmem:[#allocation11] sm:$0xff] }
0x1f9c   :  { %v1714_v61 = vadd.f32 %v1713_v60, %v3621_v39  ;;  %v2191_v60 = vld [vmem:[#allocation11 + $0x8] sm:$0xff] }
0x1f9e   :  { %1717 = vrot.lane.b32.xlu0 %v1714_v61, %s3378_s3  ;;  %v1715_v47 = vmul.f32 %v1714_v61, %v1626_v49 }
0x2010   :  { %v1718_v62 = vpop.permute.xlu0 %1717 }
0x2011   :  { %v1720_v63 = vmul.f32 %v1718_v62, %v1714_v61 }
0x2013   :  { %1722 = vrot.lane.b32.xlu1 %v1720_v63, %s3379_s14 }
0x2085   :  { %v1723_v0 = vpop.permute.xlu1 %1722 }
0x2086   :  { %v1725_v54 = vadd.f32 %v1723_v0, %v1715_v47  ;;  %v3916_v0 = vld [vmem:[%s4020_s8] ss:$0 sm:$0xff] }
0x2088   :  { %3204 = vtanh.f32 %v1725_v54 }
0x2092   :  { %v3205_v1 = vpop.eup %3204 }
0x2093   :  { %1728 = vrot.lane.b32.xlu0 %v3205_v1, %s3378_s3 }
0x2105   :  { %v1729_v2 = vpop.permute.xlu0 %1728 }
0x2106   :  { %v1731_v3 = vmul.f32 %v1729_v2, %v1714_v61  ;;  %v3115_v61 = vpack.c.bf16 %v2191_v60, %v2190_v59 }
0x2108   :  { %1733 = vrot.lane.b32.xlu1 %v1731_v3, %s3379_s14  ;;  %v2192_v3 = vld [vmem:[#allocation11 + $0x10] sm:$0xff] }
0x217a   :  { %v1734_v8 = vpop.permute.xlu1 %1733 }
0x217b   :  { %1736 = vst.msk [vmem:[#allocation3 + $0x20] sm:$0xff] %vm279_vm5, %v1734_v8  ;;  %2907 = vmatmul.mubr.msk.f32.vlgmr.msra.gmra.mrb[20].mxu1 %vm279_vm5, %v1734_v8  ;;  %v2193_v8 = vld [vmem:[#allocation11 + $0x18] sm:$0xff] }
0x217c   :  { %3103 = vmatpush3.bf16.msra.mxu1 %v3752_v29  ;;  %2928 = vmatprep.mubr.msk.f32.mxu1 %vm3376_vm4, %v3377_v25 }
0x217d   :  { %3104 = vmatprep.subr.bf16.mxu1 %v3375_v21 }
0x2180   :  { %3106 = vmatpush3.bf16.msra.mxu1 %v3758_v6 }
0x2181   :  { %3116 = vmatprep.subr.bf16.mxu1 %v3115_v61 }
0x2182   :  { %v2038_v35 = vld [vmem:[#allocation3 + $0x20] sm:$0xff] }
0x224e   :  { %v1806_v11 = vpop.f32.mrb[20].mxu1 }
0x224f   :  { %v1810_v17 = vadd.f32 %v1806_v11, %v1229_v10  ;;  %v2908_v13 = vpop.f32.mrb[21].mxu1  ;;  %v3119_v11 = vpack.c.bf16 %v2193_v8, %v2192_v3 }
0x2251   :  { %3206 = vtanh.f32 %v1810_v17 }
0x225b   :  { %v3207_v24 = vpop.eup %3206 }
0x225c   :  { %v1812_v14 = vmul.f32 %v3207_v24, %v3532_v4 }
0x225e   :  { %v1813_v29 = vadd.f32 %v1812_v14, %v3621_v39 }
0x2260   :  { %1816 = vrot.lane.b32.xlu0 %v1813_v29, %s3378_s3  ;;  %v1814_v6 = vmul.f32 %v1813_v29, %v1725_v54 }
0x22d2   :  { %v1817_v25 = vpop.permute.xlu0 %1816 }
0x22d3   :  { %v1819_v21 = vmul.f32 %v1817_v25, %v1813_v29 }
0x22d5   :  { %1821 = vrot.lane.b32.xlu1 %v1819_v21, %s3379_s14 }
0x2347   :  { %v1822_v15 = vpop.permute.xlu1 %1821 }
0x2348   :  { %v1824_v53 = vadd.f32 %v1822_v15, %v1814_v6 }
0x234a   :  { %3208 = vtanh.f32 %v1824_v53 }
0x2354   :  { %v3209_v19 = vpop.eup %3208 }
0x2355   :  { %1827 = vrot.lane.b32.xlu0 %v3209_v19, %s3378_s3 }
0x23c7   :  { %v1828_v20 = vpop.permute.xlu0 %1827 }
0x23c8   :  { %v1830_v28 = vmul.f32 %v1828_v20, %v1813_v29 }
0x23ca   :  { %1832 = vrot.lane.b32.xlu1 %v1830_v28, %s3379_s14 }
0x243c   :  { %v1833_v23 = vpop.permute.xlu1 %1832 }
0x243d   :  { %1835 = vst.msk [vmem:[#allocation3 + $0x28] sm:$0xff] %vm279_vm5, %v1833_v23  ;;  %2918 = vmatmul.mubr.msk.f32.vlgmr.msra.gmra.mrb[22].mxu0 %vm279_vm5, %v1833_v23 }
0x243e   :  { %3110 = vmatpush3.bf16.msra.mxu0 %v3107_v18  ;;  %2939 = vmatprep.mubr.msk.f32.mxu0 %vm279_vm5, %v2034_v27 }
0x243f   :  { %3112 = vmatprep.subr.bf16.mxu0 %v3111_v22 }
0x2442   :  { %3114 = vmatpush3.bf16.msra.mxu0 %v3111_v22 }
0x2444   :  { %v2039_v36 = vld [vmem:[#allocation3 + $0x28] sm:$0xff] }
0x2445   :  { %2940 = vmatmul.mubr.msk.f32.vlgmr.msra.gmra.mrb[24].mxu0 %vm279_vm5, %v2035_v30 }
0x2446   :  { %2942 = vmatprep.mubr.msk.f32.mxu0 %vm279_vm5, %v2036_v31 }
0x2449   :  { %2943 = vmatmul.mubr.msk.f32.gmra.mrb[26].mxu0 %vm279_vm5, %v2037_v34 }
0x244a   :  { %2945 = vmatprep.mubr.msk.f32.mxu0 %vm279_vm5, %v2038_v35 }
0x244d   :  { %2946 = vmatmul.mubr.msk.f32.gmra.mrb[28].mxu0 %vm279_vm5, %v2039_v36 }
0x2510   :  { %v1905_v40 = vpop.f32.mrb[22].mxu0 }
0x2511   :  { %v1909_v41 = vadd.f32 %v1905_v40, %v1230_v38  ;;  %v2919_v42 = vpop.f32.mrb[23].mxu0  ;;  %v2340_v40 = vld [vmem:[%s4023_s11 + $0x10] sm:$0xff] }
0x2513   :  { %3210 = vtanh.f32 %v1909_v41  ;;  %v2341_v41 = vld [vmem:[%s4023_s11 + $0x18] sm:$0xff] }
0x2514   :  { %v3127_v42 = vpack.c.bf16 %v2341_v41, %v2340_v40 }
0x2518   :  { %v2941_v43 = vpop.f32.mrb[24].mxu0 }
0x2519   :  { %v2143_v44 = vpop.f32.mrb[25].mxu0  ;;  %v2149_v1 = vadd.f32 %v2941_v43, %v3916_v0  ;;  %v2342_v43 = vld [vmem:[%s4023_s11 + $0x20] sm:$0xff] }
0x251a   :  { %v2144_v54 = vadd.f32 %v3916_v0, %v2143_v44  ;;  %v2343_v44 = vld [vmem:[%s4023_s11 + $0x28] sm:$0xff] }
0x251c   :  { %v2944_v45 = vpop.f32.mrb[26].mxu0 }
0x251d   :  { %v3211_v49 = vpop.eup %3210  ;;  %v2153_v46 = vpop.f32.mrb[27].mxu0  ;;  %v2159_v9 = vadd.f32 %v2944_v45, %v3916_v0  ;;  %v3131_v45 = vpack.c.bf16 %v2343_v44, %v2342_v43 }
0x251e   :  { %v1911_v48 = vmul.f32 %v3211_v49, %v3532_v4  ;;  %v2154_v2 = vadd.f32 %v3916_v0, %v2153_v46  ;;  %v2344_v49 = vld [vmem:[%s4023_s11 + $0x30] sm:$0xff]  ;;  %v2345_v46 = vld [vmem:[%s4023_s11 + $0x38] sm:$0xff] }
0x2520   :  { %v2947_v50 = vpop.f32.mrb[28].mxu0  ;;  %v1912_v52 = vadd.f32 %v1911_v48, %v3621_v39  ;;  %v3135_v48 = vpack.c.bf16 %v2345_v46, %v2344_v49 }
0x2521   :  { %v2163_v33 = vpop.f32.mrb[29].mxu0  ;;  %v2169_v24 = vadd.f32 %v2947_v50, %v3916_v0 }
0x2522   :  { %1915 = vrot.lane.b32.xlu0 %v1912_v52, %s3378_s3  ;;  %v1913_v56 = vmul.f32 %v1912_v52, %v1824_v53  ;;  %v2164_v10 = vadd.f32 %v3916_v0, %v2163_v33  ;;  %v1221_v53 = vadd.f32 %v3821_v5, %v3785_v12  ;;  %v3970_v33 = vld [vmem:[%s4022_s10] ss:$0 sm:$0xff] }
0x2524   :  { %v1231_v26 = vmul.f32 %v1221_v53, %v3532_v4 }
0x2594   :  { %v1916_v7 = vpop.permute.xlu0 %1915 }
0x2595   :  { %v1918_v55 = vmul.f32 %v1916_v7, %v1912_v52 }
0x2597   :  { %1920 = vrot.lane.b32.xlu1 %v1918_v55, %s3379_s14 }
0x2609   :  { %v1921_v57 = vpop.permute.xlu1 %1920 }
0x260a   :  { %v3908_v58 = vadd.f32 %v1921_v57, %v1913_v56 }
0x260c   :  { %3212 = vtanh.f32 %v3908_v58 }
0x260d   :  { %3214 = vtanh.f32 %v2144_v54 }
0x260e   :  { %3216 = vtanh.f32 %v2149_v1 }
0x260f   :  { %3218 = vtanh.f32 %v2154_v2 }
0x2610   :  { %3220 = vtanh.f32 %v2159_v9 }
0x2611   :  { %3222 = vtanh.f32 %v2164_v10 }
0x2612   :  { %3224 = vtanh.f32 %v2169_v24 }
0x2616   :  { %v3213_v62 = vpop.eup %3212 }
0x2617   :  { %1926 = vrot.lane.b32.xlu0 %v3213_v62, %s3378_s3  ;;  %v3215_v13 = vpop.eup %3214 }
0x2618   :  { %v3217_v14 = vpop.eup %3216 }
0x2619   :  { %v3219_v25 = vpop.eup %3218 }
0x261a   :  { %v3221_v21 = vpop.eup %3220 }
0x261b   :  { %v3223_v6 = vpop.eup %3222 }
0x261c   :  { %v3225_v15 = vpop.eup %3224 }
0x2689   :  { %v1927_v63 = vpop.permute.xlu0 %1926 }
0x268a   :  { %v1929_v47 = vmul.f32 %v1927_v63, %v1912_v52 }
0x268c   :  { %1931 = vrot.lane.b32.xlu1 %v1929_v47, %s3379_s14 }
0x26fe   :  { %v1932_v17 = vpop.permute.xlu1 %1931 }
0x26ff   :  { %1934 = vst.msk [vmem:[#allocation3 + $0x30] sm:$0xff] %vm279_vm5, %v1932_v17  ;;  %2929 = vmatmul.mubr.msk.f32.vlgmr.msra.gmra.mrb[22].mxu1 %vm279_vm5, %v1932_v17 }
0x2700   :  { %3118 = vmatpush3.bf16.msra.mxu1 %v3115_v61  ;;  %2959 = vmatprep.mubr.msk.f32.mxu1 %vm279_vm5, %v3215_v13 }
0x2701   :  { %3120 = vmatprep.subr.bf16.mxu1 %v3119_v11 }
0x2704   :  { %3122 = vmatpush3.bf16.msra.mxu1 %v3119_v11  ;;  %v2568_v11 = vld [vmem:[%s4024_s12] ss:$0 sm:$0xff]  ;;  %s3380_s12 = smov [#allocation13]  }
0x2706   :  { %v2040_v29 = vld [vmem:[#allocation3 + $0x30] sm:$0xff] }
0x2707   :  { %2960 = vmatmul.mubr.msk.f32.vlgmr.msra.gmra.mrb[24].mxu1 %vm279_vm5, %v3217_v14  ;;  %2948 = vmatprep.mubr.msk.f32.mxu0 %vm279_vm5, %v2040_v29 }
0x2708   :  { %2962 = vmatprep.mubr.msk.f32.mxu1 %vm279_vm5, %v3219_v25 }
0x270b   :  { %2963 = vmatmul.mubr.msk.f32.gmra.mrb[26].mxu1 %vm279_vm5, %v3221_v21 }
0x270c   :  { %2965 = vmatprep.mubr.msk.f32.mxu1 %vm279_vm5, %v3223_v6 }
0x270f   :  { %2966 = vmatmul.mubr.msk.f32.gmra.mrb[28].mxu1 %vm279_vm5, %v3225_v15 }
0x27d2   :  { %v2004_v16 = vpop.f32.mrb[22].mxu1 }
0x27d3   :  { %v2008_v18 = vadd.f32 %v2004_v16, %v1231_v26  ;;  %v2930_v19 = vpop.f32.mrb[23].mxu1 }
0x27d5   :  { %3226 = vtanh.f32 %v2008_v18 }
0x27da   :  { %v2961_v20 = vpop.f32.mrb[24].mxu1 }
0x27db   :  { %v2291_v28 = vpop.f32.mrb[25].mxu1  ;;  %v2297_v55 = vadd.f32 %v2961_v20, %v3970_v33 }
0x27dc   :  { %v2292_v7 = vadd.f32 %v3970_v33, %v2291_v28 }
0x27de   :  { %v2964_v32 = vpop.f32.mrb[26].mxu1 }
0x27df   :  { %v3227_v51 = vpop.eup %3226  ;;  %v2301_v22 = vpop.f32.mrb[27].mxu1 }
0x27e0   :  { %v2010_v23 = vmul.f32 %v3227_v51, %v3532_v4  ;;  %v2339_v4 = vld [vmem:[%s4023_s11 + $0x8] sm:$0xff]  ;;  %v2302_v56 = vadd.f32 %v3970_v33, %v2301_v22 }
0x27e2   :  { %v2967_v27 = vpop.f32.mrb[28].mxu1  ;;  %v2011_v30 = vadd.f32 %v2010_v23, %v3621_v39  ;;  %v3123_v39 = vpack.c.bf16 %v2339_v4, %v2338_v37 }
0x27e3   :  { %v2311_v31 = vpop.f32.mrb[29].mxu1  ;;  %v2317_v60 = vadd.f32 %v2967_v27, %v3970_v33 }
0x27e4   :  { %2014 = vrot.lane.b32.xlu0 %v2011_v30, %s3378_s3  ;;  %v2012_v34 = vmul.f32 %v2011_v30, %v3908_v58  ;;  %3124 = vmatprep.subr.bf16.mxu0 %v3123_v39  ;;  %v2307_v58 = vadd.f32 %v2964_v32, %v3970_v33  ;;  %v2312_v59 = vadd.f32 %v3970_v33, %v2311_v31 }
0x27e5   :  { %3126 = vmatpush3.bf16.msra.mxu0 %v3123_v39 }
0x27e6   :  { %3128 = vmatprep.subr.bf16.mxu0 %v3127_v42 }
0x27e9   :  { %3130 = vmatpush3.bf16.msra.mxu0 %v3127_v42 }
0x27ea   :  { %3132 = vmatprep.subr.bf16.mxu0 %v3131_v45 }
0x27ed   :  { %3134 = vmatpush3.bf16.msra.mxu0 %v3131_v45 }
0x27ee   :  { %3136 = vmatprep.subr.bf16.mxu0 %v3135_v48 }
0x27f1   :  { %3138 = vmatpush3.bf16.msra.mxu0 %v3135_v48 }
0x2856   :  { %v2015_v12 = vpop.permute.xlu0 %2014 }
0x2857   :  { %v2017_v5 = vmul.f32 %v2015_v12, %v2011_v30 }
0x2859   :  { %2019 = vrot.lane.b32.xlu1 %v2017_v5, %s3379_s14 }
0x28cb   :  { %v2020_v35 = vpop.permute.xlu1 %2019 }
0x28cc   :  { %v2022_v36 = vadd.f32 %v2020_v35, %v2012_v34 }
0x28ce   :  { %3228 = vtanh.f32 %v2022_v36 }
0x28cf   :  { %3230 = vtanh.f32 %v2292_v7 }
0x28d0   :  { %3232 = vtanh.f32 %v2297_v55 }
0x28d1   :  { %3234 = vtanh.f32 %v2302_v56 }
0x28d2   :  { %3236 = vtanh.f32 %v2307_v58 }
0x28d3   :  { %3238 = vtanh.f32 %v2312_v59 }
0x28d4   :  { %3240 = vtanh.f32 %v2317_v60 }
0x28d8   :  { %v3229_v38 = vpop.eup %3228 }
0x28d9   :  { %2025 = vrot.lane.b32.xlu0 %v3229_v38, %s3378_s3  ;;  %v3231_v62 = vpop.eup %3230 }
0x28da   :  { %v3233_v63 = vpop.eup %3232 }
0x28db   :  { %v3235_v47 = vpop.eup %3234 }
0x28dc   :  { %v3237_v54 = vpop.eup %3236 }
0x28dd   :  { %v3239_v1 = vpop.eup %3238 }
0x28de   :  { %v3241_v2 = vpop.eup %3240 }
0x294b   :  { %v2026_v50 = vpop.permute.xlu0 %2025 }
0x294c   :  { %v2028_v52 = vmul.f32 %v2026_v50, %v2011_v30 }
0x294e   :  { %2030 = vrot.lane.b32.xlu1 %v2028_v52, %s3379_s14  ;;  %s2504_s14 = sshll.u32 %s3380_s12, 4  ;;  %s2505_s14 = int_to_ptr.vmem [resolvable:$true] %s2504_s14 }
0x294f   :  { %s3338_s15 = scalar_lea.vmem %s2505_s14, 1024  ;;  %p3343_p5 = scmp.lt.s32.totalorder %s2505_s14, %s2505_s14 }
0x2950   :  { %p3339_p4 = scmp.ne.s32.totalorder %s2505_s14, %s3338_s15  ;;  %p3344_p6 = scmp.lt.s32.totalorder %s3338_s15, %s3338_s15 }
0x2952   :  { %p3345_p7 = por %p3344_p6, %p3343_p5 }
0x2954   :  { %p3346_p8 = pnand %p3345_p7, %p3339_p4 }
0x29c0   :  { %v2031_v57 = vpop.permute.xlu1 %2030 }
0x29c1   :  { %2033 = vst.msk [vmem:[#allocation3 + $0x38] sm:$0xff] %vm279_vm5, %v2031_v57 }
0x29c8   :  { %v2041_v61 = vld [vmem:[#allocation3 + $0x38] sm:$0xff] }
0x29c9   :  { %2949 = vmatmul.mubr.msk.f32.gmra.mrb[30].mxu0 %vm279_vm5, %v2041_v61 }
0x29ca   :  { %2987 = vmatprep.mubr.msk.f32.mxu0 %vm2353_vm6, %v3231_v62 }
0x29cd   :  { %2988 = vmatmul.mubr.msk.f32.vlgmr.msra.gmra.mrb[32].mxu0 %vm2353_vm6, %v3233_v63 }
0x29ce   :  { %2990 = vmatprep.mubr.msk.f32.mxu0 %vm2353_vm6, %v3235_v47 }
0x29d1   :  { %2991 = vmatmul.mubr.msk.f32.gmra.mrb[34].mxu0 %vm2353_vm6, %v3237_v54 }
0x29d2   :  { %2993 = vmatprep.mubr.msk.f32.mxu0 %vm2353_vm6, %v3239_v1 }
0x29d5   :  { %2994 = vmatmul.mubr.msk.f32.gmra.mrb[36].mxu0 %vm2353_vm6, %v3241_v2 }
0x2a9c   :  { %v2950_v3 = vpop.f32.mrb[30].mxu0 }
0x2a9d   :  { %v2179_v8 = vadd.f32 %v2950_v3, %v3916_v0  ;;  %v2173_v9 = vpop.f32.mrb[31].mxu0 }
0x2a9e   :  { %v2174_v10 = vadd.f32 %v3916_v0, %v2173_v9 }
0x2aa0   :  { %3242 = vtanh.f32 %v2174_v10  ;;  %v2989_v17 = vpop.f32.mrb[32].mxu0 }
0x2aa1   :  { %3244 = vtanh.f32 %v2179_v8  ;;  %v2450_v13 = vadd.f32 %v2989_v17, %v2568_v11  ;;  %v2444_v24 = vpop.f32.mrb[33].mxu0 }
0x2aa2   :  { %v2445_v14 = vadd.f32 %v2568_v11, %v2444_v24 }
0x2aa3   :  { %v2484_v29 = vmax.f32 %v2450_v13, 0.0 }
0x2aa4   :  { %v2483_v25 = vmax.f32 %v2445_v14, 0.0  ;;  %v2992_v21 = vpop.f32.mrb[34].mxu0 }
0x2aa5   :  { %2492 = vst [vmem:[#allocation13 + $0x8] sm:$0xff] %v2484_v29  ;;  %v2460_v6 = vadd.f32 %v2992_v21, %v2568_v11  ;;  %v2454_v15 = vpop.f32.mrb[35].mxu0 }
0x2aa6   :  { %2491 = vst [vmem:[#allocation13] sm:$0xff] %v2483_v25  ;;  %v2455_v53 = vadd.f32 %v2568_v11, %v2454_v15 }
0x2aa7   :  { %v2486_v26 = vmax.f32 %v2460_v6, 0.0 }
0x2aa8   :  { %v2485_v0 = vmax.f32 %v2455_v53, 0.0  ;;  %v2995_v16 = vpop.f32.mrb[36].mxu0 }
0x2aa9   :  { %2494 = vst [vmem:[#allocation13 + $0x18] sm:$0xff] %v2486_v26  ;;  %v2470_v18 = vadd.f32 %v2995_v16, %v2568_v11  ;;  %v2464_v19 = vpop.f32.mrb[37].mxu0 }
0x2aaa   :  { %v3243_v20 = vpop.eup %3242  ;;  %2493 = vst [vmem:[#allocation13 + $0x10] sm:$0xff] %v2485_v0  ;;  %v2465_v28 = vadd.f32 %v2568_v11, %v2464_v19 }
0x2aab   :  { %v3245_v32 = vpop.eup %3244  ;;  %v2488_v51 = vmax.f32 %v2470_v18, 0.0  ;;  %2968 = vmatprep.mubr.msk.f32.mxu1 %vm279_vm5, %v3243_v20 }
0x2aac   :  { %v2487_v22 = vmax.f32 %v2465_v28, 0.0  ;;  %2969 = vmatmul.mubr.msk.f32.gmra.mrb[30].mxu1 %vm279_vm5, %v3245_v32 }
0x2aad   :  { %2496 = vst [vmem:[#allocation13 + $0x28] sm:$0xff] %v2488_v51 }
0x2aae   :  { %2495 = vst [vmem:[#allocation13 + $0x20] sm:$0xff] %v2487_v22 }
0x2b7f   :  { %v2970_v23 = vpop.f32.mrb[30].mxu1 }
0x2b80   :  { %v2327_v27 = vadd.f32 %v2970_v23, %v3970_v33  ;;  %v2321_v30 = vpop.f32.mrb[31].mxu1 }
0x2b81   :  { %v2322_v31 = vadd.f32 %v3970_v33, %v2321_v30 }
0x2b83   :  { %3246 = vtanh.f32 %v2322_v31 }
0x2b84   :  { %3248 = vtanh.f32 %v2327_v27 }
0x2b8d   :  { %v3247_v12 = vpop.eup %3246 }
0x2b8e   :  { %v3249_v5 = vpop.eup %3248  ;;  %2996 = vmatprep.mubr.msk.f32.mxu0 %vm2353_vm6, %v3247_v12 }
0x2b8f   :  { %2997 = vmatmul.mubr.msk.f32.gmra.mrb[38].mxu0 %vm2353_vm6, %v3249_v5 }
0x2c62   :  { %v2998_v34 = vpop.f32.mrb[38].mxu0 }
0x2c63   :  { %v2480_v35 = vadd.f32 %v2998_v34, %v2568_v11  ;;  %v2474_v36 = vpop.f32.mrb[39].mxu0 }
0x2c64   :  { %v2475_v37 = vadd.f32 %v2568_v11, %v2474_v36 }
0x2c65   :  { %v2490_v4 = vmax.f32 %v2480_v35, 0.0 }
0x2c66   :  { %v2489_v39 = vmax.f32 %v2475_v37, 0.0 }
0x2c67   :  { %2498 = vst [vmem:[#allocation13 + $0x38] sm:$0xff] %v2490_v4 }
0x2c68   :  { %2497 = vst [vmem:[#allocation13 + $0x30] sm:$0xff] %v2489_v39 }
0x2c69   :  { %3349 = shalt.err (!%p3346_p8)
}
0x2c6a   :  { %s3350_s1 = scalar_lea.hbm %s4025_s13, 1024 }
0x2c6b   :  { %p3351_p9 = scmp.ne.s32.totalorder %s4025_s13, %s3350_s1  ;;  %p3354_p10 = scmp.lt.u32.totalorder %s3350_s1, %s4025_s13 }
0x2c6d   :  { %p3356_p11 = pnand %p3354_p10, %p3351_p9 }
0x2c6f   :  { %3359 = shalt.err (!%p3356_p11)
}
0x2c70   :  { %2510 = dma.vmem_to_hbm [thread:$0]  %s2505_s14, 1024, %s4025_s13, [#allocation7], %s3370_s20, %s3370_s20, %s3371_s21  }
0x2c71   :  { %3366 = dma.done.wait [#allocation7], 1024  }
0x2c72   :  { %3367 = vsyncadd [#allocation7], 4294966272 }
0x2c73   :  { %2514 = vsyncpa [#allocation6], 1 }
0x2c74   :  { %2515 = vsyncpa [#allocation9], 1 }
0x2c75   :  { %2516 = vsyncpa [#allocation12], 1 }
0x2c76   :  { %2517 = vsyncpa [#allocation7], 1 }

</bundles_post_ra>
